<compile_context>
chip_gen: v7x
topology: tpu7x:2x2x1
jax: 0.10.0
libtpu: 0.0.40
codegen_flags: <defaults>
</compile_context>

<pallas_src>
import functools

import jax
import jax.numpy as jnp
import numpy as np
from jax.experimental import pallas as pl
from jax.experimental.pallas import tpu as pltpu

LN_EPS = 1e-5

_PARAM_ORDER = ("wq", "bq", "wk", "bk", "wv", "bv", "wo", "bo",
                "g1", "beta1", "w1", "b1", "w2", "b2", "g2", "beta2")


def _round_up(x, m):
    return (x + m - 1) // m * m


def _pad_last(x, target):
    pad = target - x.shape[-1]
    if pad == 0:
        return x
    return jnp.pad(x, [(0, 0)] * (x.ndim - 1) + [(0, pad)])


def _pad2d(w, rows, cols):
    pr, pc = rows - w.shape[0], cols - w.shape[1]
    if pr == 0 and pc == 0:
        return w
    return jnp.pad(w, ((0, pr), (0, pc)))


def _decoder_layer_kernel(
    tgt_ref, mem_ref,
    wq_ref, bq_ref, wk_ref, bk_ref, wv_ref, bv_ref, wo_ref, bo_ref,
    g1_ref, beta1_ref, w1_ref, b1_ref, w2_ref, b2_ref, g2_ref, beta2_ref,
    out_ref,
    *, num_heads, dim_k, d_model, compute_dtype,
):
    f32 = jnp.float32
    cd = compute_dtype
    bb, T, Dp = tgt_ref.shape
    _, S, _ = mem_ref.shape
    H, dk = num_heads, dim_k
    Mq = bb * T
    Mk = bb * S

    # Flatten (batch_block, seq) -> rows so projection / FFN matmuls see a big M.
    x_res = tgt_ref[...].reshape(Mq, Dp)                   # f32 residual stream
    x_cd = x_res.astype(cd)
    m_cd = mem_ref[...].reshape(Mk, Dp).astype(cd)

    # --- fused Q / K / V projections (all heads in one matmul each) ---
    inv_scale = 1.0 / float(dk) ** 0.5
    q = (jnp.dot(x_cd, wq_ref[...], preferred_element_type=f32) + bq_ref[...]) * inv_scale
    k = jnp.dot(m_cd, wk_ref[...], preferred_element_type=f32) + bk_ref[...]
    v = jnp.dot(m_cd, wv_ref[...], preferred_element_type=f32) + bv_ref[...]

    # --- split heads -> (bb*H, seq, dk) and run batched attention ---
    def split_heads(t, rows):
        t = t.reshape(bb, rows, H, dk)
        t = jnp.swapaxes(t, 1, 2)                          # (bb, H, rows, dk)
        return t.reshape(bb * H, rows, dk)

    qh = split_heads(q, T).astype(cd)
    kh = split_heads(k, S).astype(cd)
    vh = split_heads(v, S).astype(cd)

    s = jnp.einsum("btd,bsd->bts", qh, kh, preferred_element_type=f32)   # (bb*H, T, S)
    s = s - jnp.max(s, axis=-1, keepdims=True)
    p = jnp.exp(s)
    p = p * pl.reciprocal(jnp.sum(p, axis=-1, keepdims=True), approx=True)
    o = jnp.einsum("bts,bsd->btd", p.astype(cd), vh, preferred_element_type=f32)  # (bb*H, T, dk)

    # --- merge heads, output projection ---
    o = jnp.swapaxes(o.reshape(bb, H, T, dk), 1, 2).reshape(Mq, H * dk)
    attn = jnp.dot(o.astype(cd), wo_ref[...], preferred_element_type=f32) + bo_ref[...]

    # --- LayerNorm over the real (unpadded) model dim; padded lanes are zero ---
    lane = jax.lax.broadcasted_iota(jnp.int32, (1, Dp), 1)
    dmask = (lane < d_model).astype(f32)
    inv_d = 1.0 / float(d_model)

    def layer_norm(x, g, b):
        mu = jnp.sum(x, axis=-1, keepdims=True) * inv_d
        diff = (x - mu) * dmask
        var = jnp.sum(diff * diff, axis=-1, keepdims=True) * inv_d
        return diff * jax.lax.rsqrt(var + LN_EPS) * g + b

    # --- residual + LN1 (dropout == identity in eval mode) ---
    x1 = layer_norm(x_res + attn, g1_ref[...], beta1_ref[...])

    # --- feed-forward ---
    h = jnp.dot(x1.astype(cd), w1_ref[...], preferred_element_type=f32) + b1_ref[...]
    h = jnp.maximum(h, 0.0)
    ff = jnp.dot(h.astype(cd), w2_ref[...], preferred_element_type=f32) + b2_ref[...]

    # --- residual + LN2 ---
    out = layer_norm(x1 + ff, g2_ref[...], beta2_ref[...])
    out_ref[...] = out.reshape(bb, T, Dp).astype(out_ref.dtype)


def transformer_decoder_layer(tgt, memory, params, *, num_heads, dim_k,
                              compute_dtype=jnp.bfloat16, block_batch=None):
    B, T, D = tgt.shape
    Bm, S, Dm = memory.shape
    assert Bm == B and Dm == D
    H, dk = num_heads, dim_k
    hdk = H * dk
    f32 = jnp.float32
    cd = compute_dtype

    Dp = _round_up(D, 128)
    Fp = _round_up(params["w1"].shape[1], 128)

    # Batch-block so each grid step feeds ~256 rows to the MXU, while keeping
    # at least 2 grid steps when possible (megacore sharding of the parallel axis).
    if block_batch is None:
        bb = max(1, min(B, 256 // max(T, 1)))
        while B % bb:
            bb -= 1
        if B // bb < 2:
            while bb > 1 and B // bb < 2:
                bb -= 1
                while B % bb:
                    bb -= 1
    else:
        bb = block_batch
    assert B % bb == 0

    # Pad activations / weights to lane-dense (multiple-of-128) last dims.
    tgt_p = _pad_last(tgt.astype(f32), Dp)
    mem_p = _pad_last(memory.astype(f32), Dp)

    weights = dict(
        wq=_pad2d(params["wq"], Dp, hdk).astype(cd),
        bq=params["bq"].astype(f32),
        wk=_pad2d(params["wk"], Dp, hdk).astype(cd),
        bk=params["bk"].astype(f32),
        wv=_pad2d(params["wv"], Dp, hdk).astype(cd),
        bv=params["bv"].astype(f32),
        wo=_pad2d(params["wo"], hdk, Dp).astype(cd),
        bo=_pad_last(params["bo"], Dp).astype(f32),
        g1=_pad_last(params["g1"], Dp).astype(f32),
        beta1=_pad_last(params["beta1"], Dp).astype(f32),
        w1=_pad2d(params["w1"], Dp, Fp).astype(cd),
        b1=_pad_last(params["b1"], Fp).astype(f32),
        w2=_pad2d(params["w2"], Fp, Dp).astype(cd),
        b2=_pad_last(params["b2"], Dp).astype(f32),
        g2=_pad_last(params["g2"], Dp).astype(f32),
        beta2=_pad_last(params["beta2"], Dp).astype(f32),
    )
    wlist = [weights[n] for n in _PARAM_ORDER]

    kernel = functools.partial(_decoder_layer_kernel, num_heads=H, dim_k=dk,
                               d_model=D, compute_dtype=cd)

    in_specs = [
        pl.BlockSpec((bb, T, Dp), lambda i: (i, 0, 0)),
        pl.BlockSpec((bb, S, Dp), lambda i: (i, 0, 0)),
    ] + [pl.BlockSpec(w.shape, lambda i: (0, 0)) for w in wlist]

    out = pl.pallas_call(
        kernel,
        out_shape=jax.ShapeDtypeStruct((B, T, Dp), f32),
        grid=(B // bb,),
        in_specs=in_specs,
        out_specs=pl.BlockSpec((bb, T, Dp), lambda i: (i, 0, 0)),
        compiler_params=pltpu.CompilerParams(
            dimension_semantics=("parallel",),
            vmem_limit_bytes=48 * 1024 * 1024,
        ),
    )(tgt_p, mem_p, *wlist)

    return out[:, :, :D].astype(tgt.dtype)


def init_params(key, dim_model, num_heads, dim_k, dim_feedforward):
    ks = jax.random.split(key, 8)
    sc_in = 1.0 / np.sqrt(dim_model)
    sc_cat = 1.0 / np.sqrt(num_heads * dim_k)
    sc_ff = 1.0 / np.sqrt(dim_feedforward)
    hk = num_heads * dim_k
    return {
        # stacked per-head projections: (D, H*dk); biases stored as (1, N)
        "wq": jax.random.normal(ks[0], (dim_model, hk), jnp.float32) * sc_in,
        "bq": jnp.zeros((1, hk), jnp.float32),
        "wk": jax.random.normal(ks[1], (dim_model, hk), jnp.float32) * sc_in,
        "bk": jnp.zeros((1, hk), jnp.float32),
        "wv": jax.random.normal(ks[2], (dim_model, hk), jnp.float32) * sc_in,
        "bv": jnp.zeros((1, hk), jnp.float32),
        "wo": jax.random.normal(ks[3], (hk, dim_model), jnp.float32) * sc_cat,
        "bo": jax.random.normal(ks[4], (1, dim_model), jnp.float32) * 0.01,
        "g1": jnp.ones((1, dim_model), jnp.float32),
        "beta1": jnp.zeros((1, dim_model), jnp.float32),
        "w1": jax.random.normal(ks[5], (dim_model, dim_feedforward), jnp.float32) * sc_in,
        "b1": jax.random.normal(ks[6], (1, dim_feedforward), jnp.float32) * 0.01,
        "w2": jax.random.normal(ks[7], (dim_feedforward, dim_model), jnp.float32) * sc_ff,
        "b2": jnp.zeros((1, dim_model), jnp.float32),
        "g2": jnp.ones((1, dim_model), jnp.float32),
        "beta2": jnp.zeros((1, dim_model), jnp.float32),
    }


def reference(tgt, memory, p, *, num_heads, dim_k, compute_dtype=jnp.bfloat16):
    """Pure-JAX reference mirroring the kernel's matmul precision (bf16 in / f32 acc)."""
    f32 = jnp.float32
    cd = compute_dtype

    def mm(a, b):
        return jnp.dot(a.astype(cd), b.astype(cd), preferred_element_type=f32)

    def layernorm(x, g, b):
        mu = jnp.mean(x, axis=-1, keepdims=True)
        var = jnp.mean((x - mu) ** 2, axis=-1, keepdims=True)
        return (x - mu) / jnp.sqrt(var + LN_EPS) * g + b

    qa = mm(tgt, p["wq"]) + p["bq"]
    ka = mm(memory, p["wk"]) + p["bk"]
    va = mm(memory, p["wv"]) + p["bv"]
    scale = float(dim_k) ** 0.5
    heads = []
    for h in range(num_heads):
        lo, hi = h * dim_k, (h + 1) * dim_k
        s = jnp.einsum("btd,bsd->bts", qa[..., lo:hi].astype(cd), ka[..., lo:hi].astype(cd),
                       preferred_element_type=f32) / scale
        sm = jax.nn.softmax(s, axis=-1)
        heads.append(jnp.einsum("bts,bsd->btd", sm.astype(cd), va[..., lo:hi].astype(cd),
                                preferred_element_type=f32))
    cat = jnp.concatenate(heads, axis=-1)
    attn = mm(cat, p["wo"]) + p["bo"]
    x1 = layernorm(tgt + attn, p["g1"], p["beta1"])
    hdn = jnp.maximum(mm(x1, p["w1"]) + p["b1"], 0.0)
    ff = mm(hdn, p["w2"]) + p["b2"]
    return layernorm(x1 + ff, p["g2"], p["beta2"])


if __name__ == "__main__":
    # Small shapes consistent with the module (dim_model divisible by num_heads here).
    B, T, S = 2, 8, 16
    dim_model, num_heads, dim_feedforward = 48, 3, 96
    dim_k = max(dim_model // num_heads, 1)

    key = jax.random.PRNGKey(0)
    k_tgt, k_mem, k_par = jax.random.split(key, 3)
    tgt = jax.random.normal(k_tgt, (B, T, dim_model), jnp.float32)
    memory = jax.random.normal(k_mem, (B, S, dim_model), jnp.float32)
    params = init_params(k_par, dim_model, num_heads, dim_k, dim_feedforward)

    out = transformer_decoder_layer(tgt, memory, params, num_heads=num_heads, dim_k=dim_k)
    out = jax.block_until_ready(out)

    ref = reference(tgt, memory, params, num_heads=num_heads, dim_k=dim_k)
    np.testing.assert_allclose(np.asarray(out), np.asarray(ref), rtol=2e-2, atol=2e-2)

    print("KERNEL_OK")
</pallas_src>

<mosaic_0001>
module attributes {stable_mosaic.version = 11 : i64} {
  func.func @_decoder_layer_kernel(%arg0: i32, %arg1: memref<1x8x128xf32, #tpu.memory_space<vmem>>, %arg2: memref<1x16x128xf32, #tpu.memory_space<vmem>>, %arg3: memref<128x48xbf16, #tpu.memory_space<vmem>>, %arg4: memref<1x48xf32, #tpu.memory_space<vmem>>, %arg5: memref<128x48xbf16, #tpu.memory_space<vmem>>, %arg6: memref<1x48xf32, #tpu.memory_space<vmem>>, %arg7: memref<128x48xbf16, #tpu.memory_space<vmem>>, %arg8: memref<1x48xf32, #tpu.memory_space<vmem>>, %arg9: memref<48x128xbf16, #tpu.memory_space<vmem>>, %arg10: memref<1x128xf32, #tpu.memory_space<vmem>>, %arg11: memref<1x128xf32, #tpu.memory_space<vmem>>, %arg12: memref<1x128xf32, #tpu.memory_space<vmem>>, %arg13: memref<128x128xbf16, #tpu.memory_space<vmem>>, %arg14: memref<1x128xf32, #tpu.memory_space<vmem>>, %arg15: memref<128x128xbf16, #tpu.memory_space<vmem>>, %arg16: memref<1x128xf32, #tpu.memory_space<vmem>>, %arg17: memref<1x128xf32, #tpu.memory_space<vmem>>, %arg18: memref<1x128xf32, #tpu.memory_space<vmem>>, %arg19: memref<1x8x128xf32, #tpu.memory_space<vmem>>) attributes {dimension_semantics = [#tpu.dimension_semantics<parallel>], iteration_bounds = array<i64: 2>, scalar_prefetch = 0 : i64, scratch_operands = 0 : i64, tpu.core_type = #tpu.core_type<tc>, window_params = [{transform_indices = @transform_0, window_bounds = array<i64: 1, 8, 128>}, {transform_indices = @transform_1, window_bounds = array<i64: 1, 16, 128>}, {pipeline_mode = #tpu.pipeline_mode<synchronous>, transform_indices = @transform_2, window_bounds = array<i64: 128, 48>}, {pipeline_mode = #tpu.pipeline_mode<synchronous>, transform_indices = @transform_3, window_bounds = array<i64: 1, 48>}, {pipeline_mode = #tpu.pipeline_mode<synchronous>, transform_indices = @transform_4, window_bounds = array<i64: 128, 48>}, {pipeline_mode = #tpu.pipeline_mode<synchronous>, transform_indices = @transform_5, window_bounds = array<i64: 1, 48>}, {pipeline_mode = #tpu.pipeline_mode<synchronous>, transform_indices = @transform_6, window_bounds = array<i64: 128, 48>}, {pipeline_mode = #tpu.pipeline_mode<synchronous>, transform_indices = @transform_7, window_bounds = array<i64: 1, 48>}, {pipeline_mode = #tpu.pipeline_mode<synchronous>, transform_indices = @transform_8, window_bounds = array<i64: 48, 128>}, {pipeline_mode = #tpu.pipeline_mode<synchronous>, transform_indices = @transform_9, window_bounds = array<i64: 1, 128>}, {pipeline_mode = #tpu.pipeline_mode<synchronous>, transform_indices = @transform_10, window_bounds = array<i64: 1, 128>}, {pipeline_mode = #tpu.pipeline_mode<synchronous>, transform_indices = @transform_11, window_bounds = array<i64: 1, 128>}, {pipeline_mode = #tpu.pipeline_mode<synchronous>, transform_indices = @transform_12, window_bounds = array<i64: 128, 128>}, {pipeline_mode = #tpu.pipeline_mode<synchronous>, transform_indices = @transform_13, window_bounds = array<i64: 1, 128>}, {pipeline_mode = #tpu.pipeline_mode<synchronous>, transform_indices = @transform_14, window_bounds = array<i64: 128, 128>}, {pipeline_mode = #tpu.pipeline_mode<synchronous>, transform_indices = @transform_15, window_bounds = array<i64: 1, 128>}, {pipeline_mode = #tpu.pipeline_mode<synchronous>, transform_indices = @transform_16, window_bounds = array<i64: 1, 128>}, {pipeline_mode = #tpu.pipeline_mode<synchronous>, transform_indices = @transform_17, window_bounds = array<i64: 1, 128>}, {transform_indices = @transform_18, window_bounds = array<i64: 1, 8, 128>}]} {
    %c0 = arith.constant 0 : index
    %c0_0 = arith.constant 0 : index
    %c0_1 = arith.constant 0 : index
    %0 = vector.load %arg1[%c0, %c0_0, %c0_1] : memref<1x8x128xf32, #tpu.memory_space<vmem>>, vector<1x8x128xf32>
    %1 = vector.shape_cast %0 : vector<1x8x128xf32> to vector<8x128xf32>
    %2 = arith.truncf %1 : vector<8x128xf32> to vector<8x128xbf16>
    %c0_2 = arith.constant 0 : index
    %c0_3 = arith.constant 0 : index
    %c0_4 = arith.constant 0 : index
    %3 = vector.load %arg2[%c0_2, %c0_3, %c0_4] : memref<1x16x128xf32, #tpu.memory_space<vmem>>, vector<1x16x128xf32>
    %4 = vector.shape_cast %3 : vector<1x16x128xf32> to vector<16x128xf32>
    %5 = arith.truncf %4 : vector<16x128xf32> to vector<16x128xbf16>
    %c0_5 = arith.constant 0 : index
    %c0_6 = arith.constant 0 : index
    %6 = vector.load %arg3[%c0_5, %c0_6] : memref<128x48xbf16, #tpu.memory_space<vmem>>, vector<128x48xbf16>
    %cst = arith.constant dense<0.000000e+00> : vector<8x48xf32>
    %7 = tpu.matmul %2, %6, %cst {dimension_numbers = #tpu.dot_dimension_numbers<[1], [0], [0], [1], [0, 0, 1, 1], [], []>} : vector<8x128xbf16>, vector<128x48xbf16>, vector<8x48xf32> -> vector<8x48xf32>
    %c0_7 = arith.constant 0 : index
    %c0_8 = arith.constant 0 : index
    %8 = vector.load %arg4[%c0_7, %c0_8] : memref<1x48xf32, #tpu.memory_space<vmem>>, vector<1x48xf32>
    %9 = vector.broadcast %8 : vector<1x48xf32> to vector<8x48xf32>
    %10 = arith.addf %7, %9 : vector<8x48xf32>
    %cst_9 = arith.constant 2.500000e-01 : f32
    %11 = vector.broadcast %cst_9 : f32 to vector<8x48xf32>
    %12 = arith.mulf %10, %11 : vector<8x48xf32>
    %c0_10 = arith.constant 0 : index
    %c0_11 = arith.constant 0 : index
    %13 = vector.load %arg5[%c0_10, %c0_11] : memref<128x48xbf16, #tpu.memory_space<vmem>>, vector<128x48xbf16>
    %cst_12 = arith.constant dense<0.000000e+00> : vector<16x48xf32>
    %14 = tpu.matmul %5, %13, %cst_12 {dimension_numbers = #tpu.dot_dimension_numbers<[1], [0], [0], [1], [0, 0, 1, 1], [], []>} : vector<16x128xbf16>, vector<128x48xbf16>, vector<16x48xf32> -> vector<16x48xf32>
    %c0_13 = arith.constant 0 : index
    %c0_14 = arith.constant 0 : index
    %15 = vector.load %arg6[%c0_13, %c0_14] : memref<1x48xf32, #tpu.memory_space<vmem>>, vector<1x48xf32>
    %16 = vector.broadcast %15 : vector<1x48xf32> to vector<16x48xf32>
    %17 = arith.addf %14, %16 : vector<16x48xf32>
    %c0_15 = arith.constant 0 : index
    %c0_16 = arith.constant 0 : index
    %18 = vector.load %arg7[%c0_15, %c0_16] : memref<128x48xbf16, #tpu.memory_space<vmem>>, vector<128x48xbf16>
    %cst_17 = arith.constant dense<0.000000e+00> : vector<16x48xf32>
    %19 = tpu.matmul %5, %18, %cst_17 {dimension_numbers = #tpu.dot_dimension_numbers<[1], [0], [0], [1], [0, 0, 1, 1], [], []>} : vector<16x128xbf16>, vector<128x48xbf16>, vector<16x48xf32> -> vector<16x48xf32>
    %c0_18 = arith.constant 0 : index
    %c0_19 = arith.constant 0 : index
    %20 = vector.load %arg8[%c0_18, %c0_19] : memref<1x48xf32, #tpu.memory_space<vmem>>, vector<1x48xf32>
    %21 = vector.broadcast %20 : vector<1x48xf32> to vector<16x48xf32>
    %22 = arith.addf %19, %21 : vector<16x48xf32>
    %23 = vector.shape_cast %12 : vector<8x48xf32> to vector<1x8x3x16xf32>
    %24 = tpu.transpose %23, [0, 2, 1, 3] : vector<1x8x3x16xf32> -> vector<1x3x8x16xf32>
    %25 = vector.shape_cast %24 : vector<1x3x8x16xf32> to vector<3x8x16xf32>
    %26 = arith.truncf %25 : vector<3x8x16xf32> to vector<3x8x16xbf16>
    %27 = vector.shape_cast %17 : vector<16x48xf32> to vector<1x16x3x16xf32>
    %28 = tpu.transpose %27, [0, 2, 1, 3] : vector<1x16x3x16xf32> -> vector<1x3x16x16xf32>
    %29 = vector.shape_cast %28 : vector<1x3x16x16xf32> to vector<3x16x16xf32>
    %30 = arith.truncf %29 : vector<3x16x16xf32> to vector<3x16x16xbf16>
    %31 = vector.shape_cast %22 : vector<16x48xf32> to vector<1x16x3x16xf32>
    %32 = tpu.transpose %31, [0, 2, 1, 3] : vector<1x16x3x16xf32> -> vector<1x3x16x16xf32>
    %33 = vector.shape_cast %32 : vector<1x3x16x16xf32> to vector<3x16x16xf32>
    %34 = arith.truncf %33 : vector<3x16x16xf32> to vector<3x16x16xbf16>
    "tpu.trace_start"() <{level = 10 : i32, message = "btd,bsd->bts"}> : () -> ()
    %cst_20 = arith.constant dense<0.000000e+00> : vector<3x8x16xf32>
    %35 = tpu.matmul %26, %30, %cst_20 {dimension_numbers = #tpu.dot_dimension_numbers<[2], [2], [1], [1], [0, 0, 0, 1, 1, 1], [0], [0]>} : vector<3x8x16xbf16>, vector<3x16x16xbf16>, vector<3x8x16xf32> -> vector<3x8x16xf32>
    "tpu.trace_stop"() : () -> ()
    %cst_21 = arith.constant dense<0xFF800000> : vector<3x8xf32>
    %36 = vector.multi_reduction <maximumf>, %35, %cst_21 [2] : vector<3x8x16xf32> to vector<3x8xf32>
    %37 = vector.shape_cast %36 : vector<3x8xf32> to vector<3x8x1xf32>
    %38 = vector.broadcast %37 : vector<3x8x1xf32> to vector<3x8x16xf32>
    %39 = arith.subf %35, %38 : vector<3x8x16xf32>
    %40 = math.exp %39 : vector<3x8x16xf32>
    %cst_22 = arith.constant dense<0.000000e+00> : vector<3x8xf32>
    %41 = vector.multi_reduction <add>, %40, %cst_22 [2] : vector<3x8x16xf32> to vector<3x8xf32>
    %42 = vector.shape_cast %41 : vector<3x8xf32> to vector<3x8x1xf32>
    %43 = tpu.reciprocal %42 {approx = true} : vector<3x8x1xf32> -> vector<3x8x1xf32>
    %44 = vector.broadcast %43 : vector<3x8x1xf32> to vector<3x8x16xf32>
    %45 = arith.mulf %40, %44 : vector<3x8x16xf32>
    %46 = arith.truncf %45 : vector<3x8x16xf32> to vector<3x8x16xbf16>
    "tpu.trace_start"() <{level = 10 : i32, message = "bts,bsd->btd"}> : () -> ()
    %cst_23 = arith.constant dense<0.000000e+00> : vector<3x8x16xf32>
    %47 = tpu.matmul %46, %34, %cst_23 {dimension_numbers = #tpu.dot_dimension_numbers<[2], [1], [1], [2], [0, 0, 0, 1, 1, 2], [0], [0]>} : vector<3x8x16xbf16>, vector<3x16x16xbf16>, vector<3x8x16xf32> -> vector<3x8x16xf32>
    "tpu.trace_stop"() : () -> ()
    %48 = vector.shape_cast %47 : vector<3x8x16xf32> to vector<1x3x8x16xf32>
    %49 = tpu.transpose %48, [0, 2, 1, 3] : vector<1x3x8x16xf32> -> vector<1x8x3x16xf32>
    %50 = vector.shape_cast %49 : vector<1x8x3x16xf32> to vector<8x48xf32>
    %51 = arith.truncf %50 : vector<8x48xf32> to vector<8x48xbf16>
    %c0_24 = arith.constant 0 : index
    %c0_25 = arith.constant 0 : index
    %52 = vector.load %arg9[%c0_24, %c0_25] : memref<48x128xbf16, #tpu.memory_space<vmem>>, vector<48x128xbf16>
    %cst_26 = arith.constant dense<0.000000e+00> : vector<8x128xf32>
    %53 = tpu.matmul %51, %52, %cst_26 {dimension_numbers = #tpu.dot_dimension_numbers<[1], [0], [0], [1], [0, 0, 1, 1], [], []>} : vector<8x48xbf16>, vector<48x128xbf16>, vector<8x128xf32> -> vector<8x128xf32>
    %c0_27 = arith.constant 0 : index
    %c0_28 = arith.constant 0 : index
    %54 = vector.load %arg10[%c0_27, %c0_28] : memref<1x128xf32, #tpu.memory_space<vmem>>, vector<1x128xf32>
    %55 = vector.broadcast %54 : vector<1x128xf32> to vector<8x128xf32>
    %56 = arith.addf %53, %55 : vector<8x128xf32>
    %57 = tpu.iota {dimensions = array<i32: 1>} : vector<1x128xi32>
    %c48_i32 = arith.constant 48 : i32
    %58 = vector.broadcast %c48_i32 : i32 to vector<1x128xi32>
    %59 = arith.cmpi slt, %57, %58 : vector<1x128xi32>
    %60 = arith.extui %59 : vector<1x128xi1> to vector<1x128xi32>
    %61 = arith.sitofp %60 : vector<1x128xi32> to vector<1x128xf32>
    %62 = arith.addf %1, %56 : vector<8x128xf32>
    %c0_29 = arith.constant 0 : index
    %c0_30 = arith.constant 0 : index
    %63 = vector.load %arg11[%c0_29, %c0_30] : memref<1x128xf32, #tpu.memory_space<vmem>>, vector<1x128xf32>
    %c0_31 = arith.constant 0 : index
    %c0_32 = arith.constant 0 : index
    %64 = vector.load %arg12[%c0_31, %c0_32] : memref<1x128xf32, #tpu.memory_space<vmem>>, vector<1x128xf32>
    %cst_33 = arith.constant dense<0.000000e+00> : vector<8xf32>
    %65 = vector.multi_reduction <add>, %62, %cst_33 [1] : vector<8x128xf32> to vector<8xf32>
    %66 = vector.shape_cast %65 : vector<8xf32> to vector<8x1xf32>
    %cst_34 = arith.constant 0.020833334 : f32
    %67 = vector.broadcast %cst_34 : f32 to vector<8x1xf32>
    %68 = arith.mulf %66, %67 : vector<8x1xf32>
    %69 = vector.broadcast %68 : vector<8x1xf32> to vector<8x128xf32>
    %70 = arith.subf %62, %69 : vector<8x128xf32>
    %71 = vector.broadcast %61 : vector<1x128xf32> to vector<8x128xf32>
    %72 = arith.mulf %70, %71 : vector<8x128xf32>
    %73 = arith.mulf %72, %72 : vector<8x128xf32>
    %cst_35 = arith.constant dense<0.000000e+00> : vector<8xf32>
    %74 = vector.multi_reduction <add>, %73, %cst_35 [1] : vector<8x128xf32> to vector<8xf32>
    %75 = vector.shape_cast %74 : vector<8xf32> to vector<8x1xf32>
    %cst_36 = arith.constant 0.020833334 : f32
    %76 = vector.broadcast %cst_36 : f32 to vector<8x1xf32>
    %77 = arith.mulf %75, %76 : vector<8x1xf32>
    %cst_37 = arith.constant 9.99999974E-6 : f32
    %78 = vector.broadcast %cst_37 : f32 to vector<8x1xf32>
    %79 = arith.addf %77, %78 : vector<8x1xf32>
    %80 = math.rsqrt %79 : vector<8x1xf32>
    %81 = vector.broadcast %80 : vector<8x1xf32> to vector<8x128xf32>
    %82 = arith.mulf %72, %81 : vector<8x128xf32>
    %83 = vector.broadcast %63 : vector<1x128xf32> to vector<8x128xf32>
    %84 = arith.mulf %82, %83 : vector<8x128xf32>
    %85 = vector.broadcast %64 : vector<1x128xf32> to vector<8x128xf32>
    %86 = arith.addf %84, %85 : vector<8x128xf32>
    %87 = arith.truncf %86 : vector<8x128xf32> to vector<8x128xbf16>
    %c0_38 = arith.constant 0 : index
    %c0_39 = arith.constant 0 : index
    %88 = vector.load %arg13[%c0_38, %c0_39] : memref<128x128xbf16, #tpu.memory_space<vmem>>, vector<128x128xbf16>
    %cst_40 = arith.constant dense<0.000000e+00> : vector<8x128xf32>
    %89 = tpu.matmul %87, %88, %cst_40 {dimension_numbers = #tpu.dot_dimension_numbers<[1], [0], [0], [1], [0, 0, 1, 1], [], []>} : vector<8x128xbf16>, vector<128x128xbf16>, vector<8x128xf32> -> vector<8x128xf32>
    %c0_41 = arith.constant 0 : index
    %c0_42 = arith.constant 0 : index
    %90 = vector.load %arg14[%c0_41, %c0_42] : memref<1x128xf32, #tpu.memory_space<vmem>>, vector<1x128xf32>
    %91 = vector.broadcast %90 : vector<1x128xf32> to vector<8x128xf32>
    %92 = arith.addf %89, %91 : vector<8x128xf32>
    %cst_43 = arith.constant 0.000000e+00 : f32
    %93 = vector.broadcast %cst_43 : f32 to vector<8x128xf32>
    %94 = arith.maximumf %92, %93 : vector<8x128xf32>
    %95 = arith.truncf %94 : vector<8x128xf32> to vector<8x128xbf16>
    %c0_44 = arith.constant 0 : index
    %c0_45 = arith.constant 0 : index
    %96 = vector.load %arg15[%c0_44, %c0_45] : memref<128x128xbf16, #tpu.memory_space<vmem>>, vector<128x128xbf16>
    %cst_46 = arith.constant dense<0.000000e+00> : vector<8x128xf32>
    %97 = tpu.matmul %95, %96, %cst_46 {dimension_numbers = #tpu.dot_dimension_numbers<[1], [0], [0], [1], [0, 0, 1, 1], [], []>} : vector<8x128xbf16>, vector<128x128xbf16>, vector<8x128xf32> -> vector<8x128xf32>
    %c0_47 = arith.constant 0 : index
    %c0_48 = arith.constant 0 : index
    %98 = vector.load %arg16[%c0_47, %c0_48] : memref<1x128xf32, #tpu.memory_space<vmem>>, vector<1x128xf32>
    %99 = vector.broadcast %98 : vector<1x128xf32> to vector<8x128xf32>
    %100 = arith.addf %97, %99 : vector<8x128xf32>
    %101 = arith.addf %86, %100 : vector<8x128xf32>
    %c0_49 = arith.constant 0 : index
    %c0_50 = arith.constant 0 : index
    %102 = vector.load %arg17[%c0_49, %c0_50] : memref<1x128xf32, #tpu.memory_space<vmem>>, vector<1x128xf32>
    %c0_51 = arith.constant 0 : index
    %c0_52 = arith.constant 0 : index
    %103 = vector.load %arg18[%c0_51, %c0_52] : memref<1x128xf32, #tpu.memory_space<vmem>>, vector<1x128xf32>
    %cst_53 = arith.constant dense<0.000000e+00> : vector<8xf32>
    %104 = vector.multi_reduction <add>, %101, %cst_53 [1] : vector<8x128xf32> to vector<8xf32>
    %105 = vector.shape_cast %104 : vector<8xf32> to vector<8x1xf32>
    %cst_54 = arith.constant 0.020833334 : f32
    %106 = vector.broadcast %cst_54 : f32 to vector<8x1xf32>
    %107 = arith.mulf %105, %106 : vector<8x1xf32>
    %108 = vector.broadcast %107 : vector<8x1xf32> to vector<8x128xf32>
    %109 = arith.subf %101, %108 : vector<8x128xf32>
    %110 = vector.broadcast %61 : vector<1x128xf32> to vector<8x128xf32>
    %111 = arith.mulf %109, %110 : vector<8x128xf32>
    %112 = arith.mulf %111, %111 : vector<8x128xf32>
    %cst_55 = arith.constant dense<0.000000e+00> : vector<8xf32>
    %113 = vector.multi_reduction <add>, %112, %cst_55 [1] : vector<8x128xf32> to vector<8xf32>
    %114 = vector.shape_cast %113 : vector<8xf32> to vector<8x1xf32>
    %cst_56 = arith.constant 0.020833334 : f32
    %115 = vector.broadcast %cst_56 : f32 to vector<8x1xf32>
    %116 = arith.mulf %114, %115 : vector<8x1xf32>
    %cst_57 = arith.constant 9.99999974E-6 : f32
    %117 = vector.broadcast %cst_57 : f32 to vector<8x1xf32>
    %118 = arith.addf %116, %117 : vector<8x1xf32>
    %119 = math.rsqrt %118 : vector<8x1xf32>
    %120 = vector.broadcast %119 : vector<8x1xf32> to vector<8x128xf32>
    %121 = arith.mulf %111, %120 : vector<8x128xf32>
    %122 = vector.broadcast %102 : vector<1x128xf32> to vector<8x128xf32>
    %123 = arith.mulf %121, %122 : vector<8x128xf32>
    %124 = vector.broadcast %103 : vector<1x128xf32> to vector<8x128xf32>
    %125 = arith.addf %123, %124 : vector<8x128xf32>
    %126 = vector.shape_cast %125 : vector<8x128xf32> to vector<1x8x128xf32>
    %c0_58 = arith.constant 0 : index
    %c0_59 = arith.constant 0 : index
    %c0_60 = arith.constant 0 : index
    %127 = vector.load %arg19[%c0_58, %c0_59, %c0_60] : memref<1x8x128xf32, #tpu.memory_space<vmem>>, vector<1x8x128xf32>
    tpu.vector_store %arg19[%c0_58, %c0_59, %c0_60], %126 {strides = array<i32>} : memref<1x8x128xf32, #tpu.memory_space<vmem>>, vector<1x8x128xf32>,
    return
  }
  func.func @transform_0(%arg0: i32) -> (i32, i32, i32) {
    %c0_i32 = arith.constant 0 : i32
    %c0_i32_0 = arith.constant 0 : i32
    %c0_i32_1 = arith.constant 0 : i32
    return %arg0, %c0_i32, %c0_i32_0 : i32, i32, i32
  }
  func.func @transform_1(%arg0: i32) -> (i32, i32, i32) {
    %c0_i32 = arith.constant 0 : i32
    %c0_i32_0 = arith.constant 0 : i32
    %c0_i32_1 = arith.constant 0 : i32
    return %arg0, %c0_i32, %c0_i32_0 : i32, i32, i32
  }
  func.func @transform_2(%arg0: i32) -> (i32, i32) {
    %c0_i32 = arith.constant 0 : i32
    %c0_i32_0 = arith.constant 0 : i32
    %c0_i32_1 = arith.constant 0 : i32
    return %c0_i32, %c0_i32_0 : i32, i32
  }
  func.func @transform_3(%arg0: i32) -> (i32, i32) {
    %c0_i32 = arith.constant 0 : i32
    %c0_i32_0 = arith.constant 0 : i32
    %c0_i32_1 = arith.constant 0 : i32
    return %c0_i32, %c0_i32_0 : i32, i32
  }
  func.func @transform_4(%arg0: i32) -> (i32, i32) {
    %c0_i32 = arith.constant 0 : i32
    %c0_i32_0 = arith.constant 0 : i32
    %c0_i32_1 = arith.constant 0 : i32
    return %c0_i32, %c0_i32_0 : i32, i32
  }
  func.func @transform_5(%arg0: i32) -> (i32, i32) {
    %c0_i32 = arith.constant 0 : i32
    %c0_i32_0 = arith.constant 0 : i32
    %c0_i32_1 = arith.constant 0 : i32
    return %c0_i32, %c0_i32_0 : i32, i32
  }
  func.func @transform_6(%arg0: i32) -> (i32, i32) {
    %c0_i32 = arith.constant 0 : i32
    %c0_i32_0 = arith.constant 0 : i32
    %c0_i32_1 = arith.constant 0 : i32
    return %c0_i32, %c0_i32_0 : i32, i32
  }
  func.func @transform_7(%arg0: i32) -> (i32, i32) {
    %c0_i32 = arith.constant 0 : i32
    %c0_i32_0 = arith.constant 0 : i32
    %c0_i32_1 = arith.constant 0 : i32
    return %c0_i32, %c0_i32_0 : i32, i32
  }
  func.func @transform_8(%arg0: i32) -> (i32, i32) {
    %c0_i32 = arith.constant 0 : i32
    %c0_i32_0 = arith.constant 0 : i32
    %c0_i32_1 = arith.constant 0 : i32
    return %c0_i32, %c0_i32_0 : i32, i32
  }
  func.func @transform_9(%arg0: i32) -> (i32, i32) {
    %c0_i32 = arith.constant 0 : i32
    %c0_i32_0 = arith.constant 0 : i32
    %c0_i32_1 = arith.constant 0 : i32
    return %c0_i32, %c0_i32_0 : i32, i32
  }
  func.func @transform_10(%arg0: i32) -> (i32, i32) {
    %c0_i32 = arith.constant 0 : i32
    %c0_i32_0 = arith.constant 0 : i32
    %c0_i32_1 = arith.constant 0 : i32
    return %c0_i32, %c0_i32_0 : i32, i32
  }
  func.func @transform_11(%arg0: i32) -> (i32, i32) {
    %c0_i32 = arith.constant 0 : i32
    %c0_i32_0 = arith.constant 0 : i32
    %c0_i32_1 = arith.constant 0 : i32
    return %c0_i32, %c0_i32_0 : i32, i32
  }
  func.func @transform_12(%arg0: i32) -> (i32, i32) {
    %c0_i32 = arith.constant 0 : i32
    %c0_i32_0 = arith.constant 0 : i32
    %c0_i32_1 = arith.constant 0 : i32
    return %c0_i32, %c0_i32_0 : i32, i32
  }
  func.func @transform_13(%arg0: i32) -> (i32, i32) {
    %c0_i32 = arith.constant 0 : i32
    %c0_i32_0 = arith.constant 0 : i32
    %c0_i32_1 = arith.constant 0 : i32
    return %c0_i32, %c0_i32_0 : i32, i32
  }
  func.func @transform_14(%arg0: i32) -> (i32, i32) {
    %c0_i32 = arith.constant 0 : i32
    %c0_i32_0 = arith.constant 0 : i32
    %c0_i32_1 = arith.constant 0 : i32
    return %c0_i32, %c0_i32_0 : i32, i32
  }
  func.func @transform_15(%arg0: i32) -> (i32, i32) {
    %c0_i32 = arith.constant 0 : i32
    %c0_i32_0 = arith.constant 0 : i32
    %c0_i32_1 = arith.constant 0 : i32
    return %c0_i32, %c0_i32_0 : i32, i32
  }
  func.func @transform_16(%arg0: i32) -> (i32, i32) {
    %c0_i32 = arith.constant 0 : i32
    %c0_i32_0 = arith.constant 0 : i32
    %c0_i32_1 = arith.constant 0 : i32
    return %c0_i32, %c0_i32_0 : i32, i32
  }
  func.func @transform_17(%arg0: i32) -> (i32, i32) {
    %c0_i32 = arith.constant 0 : i32
    %c0_i32_0 = arith.constant 0 : i32
    %c0_i32_1 = arith.constant 0 : i32
    return %c0_i32, %c0_i32_0 : i32, i32
  }
  func.func @transform_18(%arg0: i32) -> (i32, i32, i32) {
    %c0_i32 = arith.constant 0 : i32
    %c0_i32_0 = arith.constant 0 : i32
    %c0_i32_1 = arith.constant 0 : i32
    return %arg0, %c0_i32, %c0_i32_0 : i32, i32, i32
  }
}

</mosaic_0001>

<bundles_post_ra>
// kernel: tpu_custom_call.1
= control target key start
LH: loop header
LB: loop body
LE: loop exit
PB: predicated region body
PF: predicated region fallthrough
CT: control target
= control target key end

     0   :  { %s3632_s0 = inlined_call_operand.vmem [shape: f32[2,8,128], index: 0, kind: input, shape index: {}]   ;;  %s3633_s1 = inlined_call_operand.vmem [shape: f32[2,16,128], index: 1, kind: input, shape index: {}]   ;;  %s3634_s2 = inlined_call_operand.vmem [shape: bf16[128,48], index: 2, kind: input, shape index: {}]   ;;  %s3635_s3 = inlined_call_operand.vmem [shape: f32[1,48], index: 3, kind: input, shape index: {}]   ;;  %s3636_s4 = inlined_call_operand.vmem [shape: bf16[128,48], index: 4, kind: input, shape index: {}]   ;;  %s3637_s5 = inlined_call_operand.vmem [shape: f32[1,48], index: 5, kind: input, shape index: {}]   ;;  %s3638_s6 = inlined_call_operand.vmem [shape: bf16[128,48], index: 6, kind: input, shape index: {}]   ;;  %s3639_s7 = inlined_call_operand.vmem [shape: f32[1,48], index: 7, kind: input, shape index: {}]   ;;  %s3640_s8 = inlined_call_operand.vmem [shape: bf16[48,128], index: 8, kind: input, shape index: {}]   ;;  %s3641_s9 = inlined_call_operand.vmem [shape: f32[1,128], index: 9, kind: input, shape index: {}]   ;;  %s3642_s10 = inlined_call_operand.vmem [shape: f32[1,128], index: 10, kind: input, shape index: {}]   ;;  %s3643_s11 = inlined_call_operand.vmem [shape: f32[1,128], index: 11, kind: input, shape index: {}]   ;;  %s3644_s12 = inlined_call_operand.vmem [shape: bf16[128,128], index: 12, kind: input, shape index: {}]   ;;  %s3645_s13 = inlined_call_operand.vmem [shape: f32[1,128], index: 13, kind: input, shape index: {}]   ;;  %s3646_s14 = inlined_call_operand.vmem [shape: bf16[128,128], index: 14, kind: input, shape index: {}]   ;;  %s3647_s15 = inlined_call_operand.vmem [shape: f32[1,128], index: 15, kind: input, shape index: {}]   ;;  %s3648_s16 = inlined_call_operand.vmem [shape: f32[1,128], index: 16, kind: input, shape index: {}]   ;;  %s3649_s17 = inlined_call_operand.vmem [shape: f32[1,128], index: 17, kind: input, shape index: {}]   ;;  %s3650_s18 = inlined_call_operand.hbm [shape: f32[2,8,128], index: 18, kind: output, shape index: {}]  }
   0x1   :  { %3659 = sst [smem:[#allocation11_spill]] %s3632_s0 }
   0x2   :  { %3660 = sst [smem:[#allocation12_spill]] %s3633_s1 }
   0x3   :  { %3661 = sst [smem:[#allocation13_spill]] %s3634_s2 }
   0x4   :  { %3662 = sst [smem:[#allocation14_spill]] %s3635_s3 }
   0x5   :  { %3663 = sst [smem:[#allocation15_spill]] %s3648_s16 }
   0x6   :  { %3664 = sst [smem:[#allocation16_spill]] %s3649_s17 }
   0x7   :  { %3665 = sst [smem:[#allocation17_spill]] %s3650_s18 }
   0x8   :  { %23 = vsyncpa [#allocation3], 0 }
   0x9   :  { %25 = vsyncpa [#allocation3 + $0x1], 0  ;;  %s3113_s27 = smov 0   ;;  %s3115_s28 = smov 0  }
   0xa   :  { %s3117_s29 = smov 0   ;;  %s3119_s30 = smov 0  }
   0xb LB: > { %3666 = sst [smem:[#allocation5_spill]] %s2995_s27  ;;  %s3134_s0 = sadd.s32 4294967295, %s3007_s30   ;;  %s3007_s30 = sphi %s3119_s30, %s3684_s30   ;;  %s3003_s29 = sphi %s3117_s29, %s3686_s29   ;;  %s2999_s28 = sphi %s3115_s28, %s3688_s28   ;;  %s2995_s27 = sphi %s3113_s27, %s3687_s27  }
   0xc   : > { %3667 = sst [smem:[#allocation6_spill]] %s3003_s29  ;;  %s2546_s19 = sadd.s32 4294967294, %s3007_s30  }
   0xd   : > { %3668 = sst [smem:[#allocation7_spill]] %s3007_s30  ;;  %s3138_s1 = sadd.s32 1, %s3007_s30  }
   0xe   : > { %3669 = sst [smem:[#allocation8_spill]] %s3138_s1  ;;  %s426_s20 = sadd.s32 1, %s3003_s29 }
   0xf   : > { %s423_s21 = ssub.s32 %s3007_s30, %s3138_s1  ;;  %p436_p0 = scmp.ne.s32.totalorder %s3003_s29, %s2999_s28 }
  0x10   : > { %p424_p1 = scmp.eq.s32.totalorder %s423_s21, 0  ;;  %p437_p2 = scmp.eq.s32.totalorder %s3134_s0, 1 }
  0x11   : > { %p442_p3 = scmp.ne.s32.totalorder %s2999_s28, %s2995_s27  ;;  %p443_p4 = scmp.eq.s32.totalorder %s2546_s19, 1 }
  0x12   : > { %s3149_s22 = scalar_select %p424_p1, %s3003_s29, %s426_s20  }
  0x13   : > { %p3151_p5 = por %p437_p2, %p436_p0  ;;  %p3155_p6 = por %p443_p4, %p442_p3 }
  0x14   : > { %3670 = sst [smem:[#allocation9_spill]] %s3149_s22  ;;  %p2549_p7 = scmp.ge.s32.totalorder %s3007_s30, 1 }
  0x15   : > { %s3672_s23 = scalar_select %p3155_p6, 1, 0 }
  0x16   : > { %p524_p8 = scmp.lt.s32.totalorder %s3007_s30, 3 }
  0x17   : > { %3673 = sst [smem:[#allocation10_spill]] %s3672_s23 }
  0x18   : > { %p525_p9 = pnand %p2549_p7, %p524_p8 }
  0x19   : > { %v2886_v0 = vld [vmem:[%s3636_s4] sm:$0xff] (!%p525_p9)   ;;  %v3009_v1 = vmov (!%p525_p9), 0.0   ;;  %v2887_v2 = vld [vmem:[%s3636_s4 + $0x8] sm:$0xff] (!%p525_p9)   ;;  %s3674_s22 = sld [smem:[#allocation13_spill]] (!%p525_p9)  ;;  %vm3010_vm0 = vmmov (!%p525_p9), 0   ;;  %v2889_v5 = vld [vmem:[%s3636_s4 + $0x10] sm:$0xff] (!%p525_p9)   ;;  %v945_v46 = vlaneseq (!%p525_p9) }
  0x1a   : > { %528 = sbr.rel (%p525_p9) target bundleno = 2650 (0xa5a), region = 92  ;;  %2713 = vmatprep.subr.bf16.mxu1 (!%p525_p9), %v3009_v1  ;;  %2693 = vmatprep.subr.bf16.mxu0 (!%p525_p9), %v3009_v1  ;;  %p582_p10 = scmp.lt.s32.totalorder (!%p525_p9), %s3134_s0, 1  ;;  %v2891_v7 = vld [vmem:[%s3636_s4 + $0x18] sm:$0xff] (!%p525_p9)   ;;  %v2893_v9 = vld [vmem:[%s3636_s4 + $0x20] sm:$0xff] (!%p525_p9)   ;;  %v2895_v11 = vld [vmem:[%s3636_s4 + $0x28] sm:$0xff] (!%p525_p9)   ;;  %vm1647_vm1 = vcmask (!%p525_p9), 130048  }
  0x1b   : > { %2714 = vmatpush3.bf16.msra.mxu1 (!%p525_p9), %v2886_v0  ;;  %2729 = vmatprep.mubr.msk.bf16.mxu1 (!%p525_p9), %vm3010_vm0, %v3009_v1  ;;  %v2897_v13 = vld [vmem:[%s3636_s4 + $0x30] sm:$0xff] (!%p525_p9)   ;;  %s3675_s23 = sld [smem:[#allocation12_spill]] (!%p525_p9)  ;;  %s3676_s17 = sld [smem:[#allocation11_spill]] (!%p525_p9)  ;;  %v2899_v15 = vld [vmem:[%s3636_s4 + $0x38] sm:$0xff] (!%p525_p9)   ;;  %v2563_v22 = vld [vmem:[%s3637_s5] ss:$0 sm:$0xff] (!%p525_p9) }
  0x1c   : > { %2715 = vmatprep.subr.bf16.mxu1 (!%p525_p9), %v3009_v1  ;;  %2709 = vmatprep.mubr.msk.bf16.mxu0 (!%p525_p9), %vm3010_vm0, %v3009_v1  ;;  %s3677_s3 = sld [smem:[#allocation14_spill]] (!%p525_p9)  ;;  %s3011_s27 = smov (!%p525_p9), 96   ;;  %v2902_v36 = vld [vmem:[%s3638_s6] sm:$0xff] (!%p525_p9)   ;;  %v2903_v37 = vld [vmem:[%s3638_s6 + $0x8] sm:$0xff] (!%p525_p9)   ;;  %v2904_v38 = vld [vmem:[%s3638_s6 + $0x10] sm:$0xff] (!%p525_p9)   ;;  %v946_v50 = vshrl.u32 (!%p525_p9), %v945_v46, 7 }
  0x1d   : > { %v2905_v39 = vld [vmem:[%s3638_s6 + $0x18] sm:$0xff] (!%p525_p9)   ;;  %v2906_v40 = vld [vmem:[%s3638_s6 + $0x20] sm:$0xff] (!%p525_p9)   ;;  %v2907_v41 = vld [vmem:[%s3638_s6 + $0x28] sm:$0xff] (!%p525_p9)   ;;  %v3013_v44 = vmov (!%p525_p9), 1983009808   ;;  %s3015_s18 = smov (!%p525_p9), 32  }
  0x1e   : > { %v2908_v42 = vld [vmem:[%s3638_s6 + $0x30] sm:$0xff] (!%p525_p9)   ;;  %v2909_v43 = vld [vmem:[%s3638_s6 + $0x38] sm:$0xff] (!%p525_p9)   ;;  %v943_v45 = vunpack.c.l.s4 (!%p525_p9), %v3013_v44  ;;  %v3014_v47 = vmov (!%p525_p9), 1934713408   ;;  %vm2094_vm2 = vcmask (!%p525_p9), 261120   ;;  %vm2128_vm3 = vcmask (!%p525_p9), 392192  }
  0x1f   : > { %v2888_v3 = vld [vmem:[%s3674_s22] sm:$0xff] (!%p525_p9)   ;;  %v2890_v4 = vld [vmem:[%s3674_s22 + $0x8] sm:$0xff] (!%p525_p9)   ;;  %2716 = vmatpush3.bf16.msra.mxu1 (!%p525_p9), %v2887_v2  ;;  %v2892_v6 = vld [vmem:[%s3674_s22 + $0x10] sm:$0xff] (!%p525_p9)   ;;  %v974_v48 = vunpack.c.l.s4 (!%p525_p9), %v3014_v47  ;;  %s3678_s20 = sld [smem:[#allocation15_spill]] (!%p525_p9) }
  0x20   : > { %2694 = vmatpush3.bf16.msra.mxu0 (!%p525_p9), %v2888_v3  ;;  %2717 = vmatprep.subr.bf16.mxu1 (!%p525_p9), %v3009_v1  ;;  %v2894_v8 = vld [vmem:[%s3674_s22 + $0x18] sm:$0xff] (!%p525_p9)   ;;  %v2896_v10 = vld [vmem:[%s3674_s22 + $0x20] sm:$0xff] (!%p525_p9)   ;;  %v2898_v12 = vld [vmem:[%s3674_s22 + $0x28] sm:$0xff] (!%p525_p9)   ;;  %v944_v49 = vunpack.c.0.s8 (!%p525_p9), %v943_v45 }
  0x21   : > { %2695 = vmatprep.subr.bf16.mxu0 %v3009_v1  ;;  %s583_s29 = scalar_select %p582_p10, %s3134_s0, 1  ;;  %v2900_v14 = vld [vmem:[%s3674_s22 + $0x30] sm:$0xff]   ;;  %v2901_v18 = vld [vmem:[%s3674_s22 + $0x38] sm:$0xff]   ;;  %v975_v51 = vunpack.c.0.s8 %v974_v48 }
  0x22   : > { %v2554_v24 = vld [vmem:[%s3677_s3] ss:$0 sm:$0xff]  ;;  %v3302_v52 = vsub.s32 %v944_v49, %v946_v50 }
  0x23   : > { %2718 = vmatpush3.bf16.msra.mxu1 %v2889_v5  ;;  %s2631_s1 = sshll.u32 %s583_s29, 4  ;;  %s2551_s26 = sshll.u32 %s583_s29, 3  ;;  %v3305_v58 = vsub.s32 %v975_v51, %v946_v50 }
  0x24   : > { %2696 = vmatpush3.bf16.msra.mxu0 %v2890_v4  ;;  %2719 = vmatprep.subr.bf16.mxu1 %v3009_v1  ;;  %s590_s25 = scalar_lea.vmem %s3675_s23, %s2631_s1  ;;  %s585_s16 = scalar_lea.vmem %s3676_s17, %s2551_s26 }
  0x25   : > { %2697 = vmatprep.subr.bf16.mxu0 %v3009_v1  ;;  %v594_v16 = vld [vmem:[%s590_s25] sm:$0xff]  ;;  %v595_v17 = vld [vmem:[%s590_s25 + $0x8] sm:$0xff]  ;;  %s3012_s23 = smov 112   ;;  %s3016_s26 = smov 16  }
  0x26   : > { %v3235_v19 = vld [vmem:[%s585_s16] sm:$0xff]  ;;  %v596_v20 = vpack.c.bf16 %v595_v17, %v594_v16  ;;  %s579_s25 = sand.u32 1, %s2999_s28   ;;  %s2628_s1 = sshll.u32 %s3134_s0, 7 }
  0x27   : > { %2720 = vmatpush3.bf16.msra.mxu1 %v2891_v7  ;;  %v593_v21 = vpack.c.bf16 %v3235_v19, %v3235_v19  ;;  %s2550_s29 = sshll.u32 %s579_s25, 3  ;;  %s2462_s30 = scalar_lea.sflag [#allocation3], %s579_s25 }
  0x28   : > { %2698 = vmatpush3.bf16.msra.mxu0 %v2892_v6  ;;  %2721 = vmatprep.subr.bf16.mxu1 %v3009_v1  ;;  %s581_s24 = scalar_lea.vmem [#allocation2], %s2550_s29  ;;  %s3017_s0 = smov [#allocation2]  }
  0x29   : > { %2699 = vmatprep.subr.bf16.mxu0 %v3009_v1  ;;  %s2475_s16 = sshll.u32 %s581_s24, 4  ;;  %s2949_s29 = sshll.u32 %s3017_s0, 4  ;;  %s3592_s16 = int_to_ptr.vmem [resolvable:$true] %s2475_s16  ;;  %s2950_s29 = int_to_ptr.vmem [resolvable:$false] %s2949_s29 }
  0x2a   : > { %s2945_s19 = scalar_lea.vmem %s3592_s16, 128  ;;  %p2952_p0 = scmp.lt.s32.totalorder %s3592_s16, %s2950_s29 }
  0x2b   : > { %2722 = vmatpush3.bf16.msra.mxu1 %v2893_v9  ;;  %p2946_p11 = scmp.ne.s32.totalorder %s3592_s16, %s2945_s19 }
  0x2c   : > { %2700 = vmatpush3.bf16.msra.mxu0 %v2894_v8  ;;  %2723 = vmatprep.subr.bf16.mxu1 %v3009_v1 }
  0x2d   : > { %2701 = vmatprep.subr.bf16.mxu0 %v3009_v1  ;;  %p2947_p12 = pnand %p2946_p11, %p3151_p5 }
  0x2f   : > { %2724 = vmatpush3.bf16.msra.mxu1 %v2895_v11  ;;  %p2948_p13 = pneg %p2947_p12 }
  0x30   : > { %2702 = vmatpush3.bf16.msra.mxu0 %v2896_v10  ;;  %2725 = vmatprep.subr.bf16.mxu1 %v3009_v1 }
  0x31   : > { %2703 = vmatprep.subr.bf16.mxu0 %v3009_v1 }
  0x33   : > { %2726 = vmatpush3.bf16.msra.mxu1 %v2897_v13 }
  0x34   : > { %2704 = vmatpush3.bf16.msra.mxu0 %v2898_v12  ;;  %2727 = vmatprep.subr.bf16.mxu1 %v3009_v1 }
  0x35   : > { %2705 = vmatprep.subr.bf16.mxu0 %v3009_v1 }
  0x37   : > { %2728 = vmatpush3.bf16.msra.mxu1 %v2899_v15 }
  0x38   : > { %2706 = vmatpush3.bf16.msra.mxu0 %v2900_v14  ;;  %2753 = vmatprep.subr.bf16.mxu1 %v3009_v1 }
  0x39   : > { %2707 = vmatprep.subr.bf16.mxu0 %v3009_v1 }
  0x3a   : > { %2730 = vmatmul.mubr.bf16.vlgmr.msra.gmra.mrb[0].mxu1 %v596_v20 }
  0x3b   : > { %2755 = vmatprep.mubr.msk.bf16.mxu1 %vm3010_vm0, %v3009_v1 }
  0x3c   : > { %2708 = vmatpush3.bf16.msra.mxu0 %v2901_v18 }
  0x3d   : > { %2733 = vmatprep.subr.bf16.mxu0 %v3009_v1 }
  0x3f   : > { %2710 = vmatmul.mubr.bf16.vlgmr.msra.gmra.mrb[0].mxu0 %v593_v21 }
  0x40   : > { %2749 = vmatprep.mubr.msk.bf16.mxu0 %vm3010_vm0, %v3009_v1  ;;  %2734 = vmatpush3.bf16.msra.mxu0 %v2902_v36 }
  0x41   : > { %2735 = vmatprep.subr.bf16.mxu0 %v3009_v1 }
  0x44   : > { %2736 = vmatpush3.bf16.msra.mxu0 %v2903_v37 }
  0x45   : > { %2737 = vmatprep.subr.bf16.mxu0 %v3009_v1 }
  0x48   : > { %2738 = vmatpush3.bf16.msra.mxu0 %v2904_v38 }
  0x49   : > { %2739 = vmatprep.subr.bf16.mxu0 %v3009_v1 }
  0x4c   : > { %2740 = vmatpush3.bf16.msra.mxu0 %v2905_v39 }
  0x4d   : > { %2741 = vmatprep.subr.bf16.mxu0 %v3009_v1 }
  0x50   : > { %2742 = vmatpush3.bf16.msra.mxu0 %v2906_v40 }
  0x51   : > { %2743 = vmatprep.subr.bf16.mxu0 %v3009_v1 }
  0x54   : > { %2744 = vmatpush3.bf16.msra.mxu0 %v2907_v41 }
  0x55   : > { %2745 = vmatprep.subr.bf16.mxu0 %v3009_v1 }
  0x58   : > { %2746 = vmatpush3.bf16.msra.mxu0 %v2908_v42 }
  0x59   : > { %2747 = vmatprep.subr.bf16.mxu0 %v3009_v1 }
  0x5c   : > { %2748 = vmatpush3.bf16.msra.mxu0 %v2909_v43 }
  0x5d   : > { %2789 = vmatprep.subr.bf16.mxu0 %v3009_v1 }
  0x5f   : > { %2750 = vmatmul.mubr.bf16.vlgmr.msra.gmra.mrb[4].mxu0 %v596_v20 }
  0x60   : > { %2795 = vmatprep.mubr.msk.bf16.mxu0 %vm3010_vm0, %v3009_v1 }
 0x10d   : > { %v814_v23 = vpop.f32.mrb[0].mxu1 }
 0x10e   : > { %v815_v25 = vadd.f32 %v2563_v22, %v814_v23  ;;  %v2731_v26 = vpop.f32.mrb[1].mxu1 }
 0x10f   : > { %v817_v27 = vpop.f32.mrb[2].mxu1 }
 0x110   : > { %1085 = vrot.lane.b32.xlu1 %v815_v25, %s3011_s27  ;;  %1079 = vrot.lane.b32.xlu0 %v815_v25, %s3012_s23  ;;  %v2732_v29 = vpop.f32.mrb[3].mxu1  ;;  %v3255_v33 = vadd.f32 %v2563_v22, %v817_v27 }
 0x112   : > { %v702_v28 = vpop.f32.mrb[0].mxu0 }
 0x113   : > { %v703_v30 = vadd.f32 %v2554_v24, %v702_v28  ;;  %v2711_v31 = vpop.f32.mrb[1].mxu0 }
 0x114   : > { %v705_v32 = vpop.f32.mrb[2].mxu0  ;;  %1087 = vrot.lane.b32.xlu1 %v3255_v33, %s3011_s27  ;;  %1081 = vrot.lane.b32.xlu0 %v3255_v33, %s3012_s23 }
 0x115   : > { %v2712_v34 = vpop.f32.mrb[3].mxu0  ;;  %v3257_v35 = vmul.f32 0.25, %v703_v30 }
 0x118   : > { %937 = vrot.lane.b32.xlu1 %v3257_v35, %s3011_s27  ;;  %934 = vrot.lane.b32.xlu0 %v3257_v35, %s3012_s23 }
 0x182   : > { %v1086_v53 = vpop.permute.xlu1 %1085  ;;  %v1080_v54 = vpop.permute.xlu0 %1079 }
 0x183   : > { %v1091_v55 = vcombine.low %v815_v25, %v1086_v53  ;;  %v1092_v56 = vcombine.high %v815_v25, %v1086_v53  ;;  %v1107_v57 = vcombine.high %v1080_v54, %v3009_v1  ;;  %v1114_v61 = vrot.slane %v1080_v54, %v3302_v52 }
 0x185   : > { %v1099_v59 = vrot.slane %v1091_v55, %v3302_v52  ;;  %v1106_v60 = vrot.slane %v1092_v56, %v3302_v52  ;;  %v1121_v62 = vrot.slane %v1107_v57, %v3302_v52 }
 0x186   : > { %v1088_v63 = vpop.permute.xlu1 %1087  ;;  %v1082_v0 = vpop.permute.xlu0 %1081 }
 0x187   : > { %v1122_v2 = vcombine.low %v1099_v59, %v1114_v61  ;;  %v1123_v3 = vcombine.high %v1099_v59, %v1114_v61  ;;  %v1138_v4 = vcombine.low %v1106_v60, %v1121_v62  ;;  %v1139_v5 = vcombine.high %v1106_v60, %v1121_v62 }
 0x188   : > { %v1158_v6 = vcombine.low %v3255_v33, %v1088_v63  ;;  %v1159_v7 = vcombine.high %v3255_v33, %v1088_v63  ;;  %v1174_v8 = vcombine.high %v1082_v0, %v3009_v1  ;;  %v1181_v15 = vrot.slane %v1082_v0, %v3302_v52 }
 0x189   : > { %v1130_v9 = vrot.slane %v1122_v2, %v3305_v58  ;;  %v1137_v10 = vrot.slane %v1123_v3, %v3305_v58  ;;  %v1146_v11 = vrot.slane %v1138_v4, %v3305_v58  ;;  %v1153_v12 = vrot.slane %v1139_v5, %v3305_v58 }
 0x18a   : > { %v1166_v13 = vrot.slane %v1158_v6, %v3302_v52  ;;  %v1173_v14 = vrot.slane %v1159_v7, %v3302_v52  ;;  %v1188_v16 = vrot.slane %v1174_v8, %v3302_v52  ;;  %v938_v26 = vpop.permute.xlu1 %937  ;;  %v935_v27 = vpop.permute.xlu0 %934 }
 0x18b   : > { %v1225_v17 = vcombine.low %v1130_v9, %v1137_v10  ;;  %v2583_v18 = vcombine.high %v1130_v9, %v1137_v10  ;;  %v1241_v20 = vcombine.low %v1146_v11, %v1153_v12  ;;  %v2584_v21 = vcombine.high %v1146_v11, %v1153_v12 }
 0x18c   : > { %v1189_v22 = vcombine.low %v1166_v13, %v1181_v15  ;;  %v1190_v23 = vcombine.high %v1166_v13, %v1181_v15  ;;  %v1205_v24 = vcombine.low %v1173_v14, %v1188_v16  ;;  %v1206_v25 = vcombine.high %v1173_v14, %v1188_v16 }
 0x18d   : > { %v3323_v28 = vrot.slane %v1225_v17, %v3302_v52  ;;  %v3326_v29 = vrot.slane %v2583_v18, %v3302_v52  ;;  %v3329_v30 = vrot.slane %v1241_v20, %v3302_v52  ;;  %v3332_v31 = vrot.slane %v2584_v21, %v3302_v52 }
 0x18e   : > { %v1197_v32 = vrot.slane %v1189_v22, %v3305_v58  ;;  %v1204_v33 = vrot.slane %v1190_v23, %v3305_v58  ;;  %v1213_v34 = vrot.slane %v1205_v24, %v3305_v58  ;;  %v1220_v36 = vrot.slane %v1206_v25, %v3305_v58 }
 0x18f   : > { %v940_v37 = vcombine.low %v3257_v35, %v938_v26  ;;  %v941_v38 = vcombine.high %v3257_v35, %v938_v26  ;;  %v956_v39 = vcombine.high %v935_v27, %v3009_v1  ;;  %v963_v40 = vrot.slane %v935_v27, %v3302_v52 }
 0x190   : > { %v1292_v41 = vcombine.low %v1197_v32, %v1204_v33  ;;  %v2585_v42 = vcombine.high %v1197_v32, %v1204_v33  ;;  %v1308_v43 = vcombine.low %v1213_v34, %v1220_v36  ;;  %v2586_v44 = vcombine.high %v1213_v34, %v1220_v36 }
 0x191   : > { %v948_v45 = vrot.slane %v940_v37, %v3302_v52  ;;  %v955_v47 = vrot.slane %v941_v38, %v3302_v52  ;;  %v970_v48 = vrot.slane %v956_v39, %v3302_v52  ;;  %v1257_v49 = vcombine.low %v3323_v28, %v3326_v29 }
 0x192   : > { %v1299_v50 = vrot.slane %v1292_v41, %v3302_v52  ;;  %v1307_v35 = vrot.slane %v2585_v42, %v3302_v52  ;;  %v1315_v51 = vrot.slane %v1308_v43, %v3302_v52  ;;  %v1323_v53 = vrot.slane %v2586_v44, %v3302_v52 }
 0x193   : > { %v971_v54 = vcombine.low %v948_v45, %v963_v40  ;;  %v972_v55 = vcombine.high %v948_v45, %v963_v40  ;;  %v987_v56 = vcombine.low %v955_v47, %v970_v48  ;;  %v988_v57 = vcombine.high %v955_v47, %v970_v48 }
 0x194   : > { %v1265_v59 = vrot.slane %v1257_v49, %v3305_v58  ;;  %v1273_v60 = vcombine.low %v3329_v30, %v3332_v31  ;;  %v1324_v61 = vcombine.low %v1299_v50, %v1307_v35  ;;  %v1340_v62 = vcombine.low %v1315_v51, %v1323_v53 }
 0x195   : > { %v979_v63 = vrot.slane %v971_v54, %v3305_v58  ;;  %v986_v0 = vrot.slane %v972_v55, %v3305_v58  ;;  %v995_v2 = vrot.slane %v987_v56, %v3305_v58  ;;  %v1002_v3 = vrot.slane %v988_v57, %v3305_v58 }
 0x196   : > { %v1281_v4 = vrot.slane %v1273_v60, %v3305_v58  ;;  %v1332_v5 = vrot.slane %v1324_v61, %v3305_v58  ;;  %v1348_v6 = vrot.slane %v1340_v62, %v3305_v58  ;;  %v1325_v23 = vcombine.high %v1299_v50, %v1307_v35 }
 0x197   : > { %v1007_v7 = vcombine.low %v979_v63, %v986_v0  ;;  %v2581_v8 = vcombine.high %v979_v63, %v986_v0  ;;  %v1023_v9 = vcombine.low %v995_v2, %v1002_v3  ;;  %v2582_v10 = vcombine.high %v995_v2, %v1002_v3 }
 0x198   : > { %v1289_v11 = vcombine.low %v1265_v59, %v1281_v4  ;;  %v1356_v12 = vcombine.low %v1332_v5, %v1348_v6  ;;  %v1357_v22 = vcombine.high %v1332_v5, %v1348_v6  ;;  %v1341_v26 = vcombine.high %v1315_v51, %v1323_v53  ;;  %v926_v51 = vpop.f32.mrb[4].mxu0 }
 0x199   : > { %v1014_v13 = vrot.slane %v1007_v7, %v3302_v52  ;;  %v1022_v14 = vrot.slane %v2581_v8, %v3302_v52  ;;  %v1030_v15 = vrot.slane %v1023_v9, %v3302_v52  ;;  %v1038_v16 = vrot.slane %v2582_v10, %v3302_v52  ;;  %v2751_v53 = vpop.f32.mrb[5].mxu0  ;;  %v2572_v9 = vld [vmem:[%s3639_s7] ss:$0 sm:$0xff] }
 0x19a   : > { %v1359_v17 = vpack.c.bf16 %v1356_v12, %v1289_v11  ;;  %v1290_v27 = vcombine.high %v1265_v59, %v1281_v4  ;;  %v1258_v32 = vcombine.high %v3323_v28, %v3326_v29  ;;  %v1274_v33 = vcombine.high %v3329_v30, %v3332_v31  ;;  %v929_v54 = vpop.f32.mrb[6].mxu0 }
 0x19b   : > { %v1039_v18 = vcombine.low %v1014_v13, %v1022_v14  ;;  %v1055_v20 = vcombine.low %v1030_v15, %v1038_v16  ;;  %v1339_v37 = vrot.slane %v1325_v23, %v3305_v58  ;;  %v1355_v38 = vrot.slane %v1341_v26, %v3305_v58  ;;  %v2752_v55 = vpop.f32.mrb[7].mxu0 }
 0x19c   : > { %v1652_v21 = vsel %vm1647_vm1, %v1359_v17, 0  ;;  %v1360_v36 = vpack.c.bf16 %v1357_v22, %v1290_v27  ;;  %v1272_v40 = vrot.slane %v1258_v32, %v3305_v58  ;;  %v1288_v41 = vrot.slane %v1274_v33, %v3305_v58 }
 0x19d   : > { %v1047_v24 = vrot.slane %v1039_v18, %v3305_v58  ;;  %2754 = vmatpush3.bf16.xpose.msra.mxu1 %v1652_v21  ;;  %v1063_v25 = vrot.slane %v1055_v20, %v3305_v58  ;;  %v1358_v43 = vcombine.low %v1339_v37, %v1355_v38  ;;  %v1040_v28 = vcombine.high %v1014_v13, %v1022_v14 }
 0x19e   : > { %2759 = vmatprep.subr.bf16.mxu1 %v3009_v1  ;;  %v1698_v42 = vsel %vm1647_vm1, %v1360_v36, 0  ;;  %v1056_v29 = vcombine.high %v1030_v15, %v1038_v16  ;;  %v1291_v31 = vcombine.low %v1272_v40, %v1288_v41  ;;  %v927_v10 = vadd.f32 %v2572_v9, %v926_v51 }
 0x19f   : > { %v1071_v34 = vcombine.low %v1047_v24, %v1063_v25  ;;  %v1072_v30 = vcombine.high %v1047_v24, %v1063_v25  ;;  %v1054_v45 = vrot.slane %v1040_v28, %v3305_v58  ;;  %v930_v11 = vadd.f32 %v2572_v9, %v929_v54 }
 0x1a0   : > { %v1361_v44 = vpack.c.bf16 %v1358_v43, %v1291_v31  ;;  %v1070_v48 = vrot.slane %v1056_v29, %v3305_v58 }
 0x1a1   : > { %v1074_v39 = vpack.c.bf16 %v1071_v34, %v1071_v34  ;;  %v1075_v47 = vpack.c.bf16 %v1072_v30, %v1072_v30 }
 0x1a2   : > { %v1744_v49 = vsel %vm1647_vm1, %v1361_v44, 0  ;;  %v1073_v50 = vcombine.low %v1054_v45, %v1070_v48 }
 0x1a4   : > { %2756 = vmatmul.mubr.msk.bf16.vlgmr.msra.gmra.mrb[4].mxu1 %vm1647_vm1, %v1074_v39  ;;  %v1076_v35 = vpack.c.bf16 %v1073_v50, %v1073_v50 }
 0x1a5   : > { %2760 = vmatpush3.bf16.xpose.msra.mxu1 %v1698_v42  ;;  %2761 = vmatprep.mubr.msk.bf16.mxu1 %vm3010_vm0, %v3009_v1 }
 0x1a6   : > { %2765 = vmatprep.subr.bf16.mxu1 %v3009_v1 }
 0x1ac   : > { %2762 = vmatmul.mubr.msk.bf16.vlgmr.msra.gmra.mrb[8].mxu1 %vm1647_vm1, %v1075_v47 }
 0x1ad   : > { %2766 = vmatpush3.bf16.xpose.msra.mxu1 %v1744_v49  ;;  %2767 = vmatprep.mubr.msk.bf16.mxu1 %vm3010_vm0, %v3009_v1 }
 0x1ae   : > { %2771 = vmatprep.subr.bf16.mxu1 %v3009_v1 }
 0x1b4   : > { %2768 = vmatmul.mubr.msk.bf16.vlgmr.msra.gmra.mrb[12].mxu1 %vm1647_vm1, %v1076_v35 }
 0x1b5   : > { %2773 = vmatprep.mubr.msk.bf16.mxu1 %vm3010_vm0, %v3009_v1 }
 0x277   : > { %v1688_v56 = vpop.f32.mrb[4].mxu1 }
 0x278   : > { %v2757_v57 = vpop.f32.mrb[5].mxu1  ;;  %v1786_v59 = vsel %vm1647_vm1, %v1688_v56, -inf }
 0x279   : > { %1787 = vmax.xlane.f32.xlu0 %v1786_v59  ;;  %v1691_v60 = vpop.f32.mrb[6].mxu1 }
 0x27a   : > { %v2758_v61 = vpop.f32.mrb[7].mxu1 }
 0x27f   : > { %v1734_v62 = vpop.f32.mrb[8].mxu1 }
 0x280   : > { %v2763_v63 = vpop.f32.mrb[9].mxu1  ;;  %v1789_v0 = vsel %vm1647_vm1, %v1734_v62, -inf }
 0x281   : > { %1790 = vmax.xlane.f32.xlu1 %v1789_v0  ;;  %v1737_v2 = vpop.f32.mrb[10].mxu1 }
 0x282   : > { %v2764_v3 = vpop.f32.mrb[11].mxu1 }
 0x287   : > { %v1780_v4 = vpop.f32.mrb[12].mxu1 }
 0x288   : > { %v2769_v5 = vpop.f32.mrb[13].mxu1  ;;  %v1792_v6 = vsel %vm1647_vm1, %v1780_v4, -inf }
 0x289   : > { %1793 = vmax.xlane.f32.xlu0 %v1792_v6  ;;  %v1783_v7 = vpop.f32.mrb[14].mxu1 }
 0x28a   : > { %v2770_v8 = vpop.f32.mrb[15].mxu1 }
 0x292   : > { %1364 = vrot.lane.b32.xlu1 %v927_v10, %s3012_s23 }
 0x296   : > { %1370 = vrot.lane.b32.xlu1 %v927_v10, %s3011_s27 }
 0x29a   : > { %1372 = vrot.lane.b32.xlu1 %v930_v11, %s3011_s27 }
 0x306   : > { %v1788_v12 = vpop.xlane.xlu0 %1787 }
 0x307   : > { %v1795_v13 = vsub.f32 %v1688_v56, %v1788_v12 }
 0x309   : > { %v1798_v14 = vmul.f32 1.442695, %v1795_v13 }
 0x30b   : > { %2929 = vpow2.f32 %v1798_v14 }
 0x30e   : > { %v1791_v23 = vpop.xlane.xlu1 %1790 }
 0x30f   : > { %v1796_v24 = vsub.f32 %v1734_v62, %v1791_v23 }
 0x311   : > { %v1800_v25 = vmul.f32 1.442695, %v1796_v24 }
 0x312   : > { %v1365_v32 = vpop.permute.xlu1 %1364 }
 0x313   : > { %v1392_v36 = vcombine.high %v1365_v32, %v3009_v1  ;;  %v1399_v38 = vrot.slane %v1365_v32, %v3302_v52 }
 0x315   : > { %v3401_v15 = vpop.eup %2929  ;;  %v1406_v40 = vrot.slane %v1392_v36, %v3302_v52 }
 0x316   : > { %v1794_v16 = vpop.xlane.xlu0 %1793  ;;  %v1804_v17 = vsel %vm1647_vm1, %v3401_v15, 0.0  ;;  %v1371_v33 = vpop.permute.xlu1 %1370 }
 0x317   : > { %v1797_v18 = vsub.f32 %v1780_v4, %v1794_v16  ;;  %1805 = vadd.xlane.f32.xlu0 %v1804_v17  ;;  %v1376_v34 = vcombine.low %v927_v10, %v1371_v33  ;;  %v1377_v37 = vcombine.high %v927_v10, %v1371_v33 }
 0x319   : > { %v1802_v20 = vmul.f32 1.442695, %v1797_v18  ;;  %v1384_v39 = vrot.slane %v1376_v34, %v3302_v52  ;;  %v1391_v41 = vrot.slane %v1377_v37, %v3302_v52 }
 0x31a   : > { %v1373_v30 = vpop.permute.xlu1 %1372 }
 0x31b   : > { %2931 = vpow2.f32 %v1802_v20  ;;  %v1407_v42 = vcombine.low %v1384_v39, %v1399_v38  ;;  %v1408_v43 = vcombine.high %v1384_v39, %v1399_v38  ;;  %v1423_v28 = vcombine.low %v1391_v41, %v1406_v40 }
 0x31c   : > { %2933 = vpow2.f32 %v1800_v25  ;;  %v1424_v29 = vcombine.high %v1391_v41, %v1406_v40  ;;  %v1443_v49 = vcombine.low %v930_v11, %v1373_v30  ;;  %v1444_v50 = vcombine.high %v930_v11, %v1373_v30 }
 0x31d   : > { %v1415_v31 = vrot.slane %v1407_v42, %v3305_v58  ;;  %v1422_v44 = vrot.slane %v1408_v43, %v3305_v58  ;;  %v1431_v45 = vrot.slane %v1423_v28, %v3305_v58 }
 0x31e   : > { %v1438_v47 = vrot.slane %v1424_v29, %v3305_v58  ;;  %v1451_v56 = vrot.slane %v1443_v49, %v3302_v52  ;;  %v1458_v60 = vrot.slane %v1444_v50, %v3302_v52 }
 0x31f   : > { %v1510_v35 = vcombine.low %v1415_v31, %v1422_v44  ;;  %v2587_v51 = vcombine.high %v1415_v31, %v1422_v44 }
 0x320   : > { %v1526_v53 = vcombine.low %v1431_v45, %v1438_v47  ;;  %v2588_v54 = vcombine.high %v1431_v45, %v1438_v47 }
 0x321   : > { %v1517_v61 = vrot.slane %v1510_v35, %v3302_v52  ;;  %v1525_v2 = vrot.slane %v2587_v51, %v3302_v52 }
 0x322   : > { %v1533_v3 = vrot.slane %v1526_v53, %v3302_v52  ;;  %v1541_v4 = vrot.slane %v2588_v54, %v3302_v52 }
 0x323   : > { %v1542_v13 = vcombine.low %v1517_v61, %v1525_v2  ;;  %v1543_v44 = vcombine.high %v1517_v61, %v1525_v2  ;;  %v2911_v61 = vld [vmem:[%s3640_s8 + $0x8] sm:$0xff]  }
 0x324   : > { %v1558_v14 = vcombine.low %v1533_v3, %v1541_v4  ;;  %v1559_v45 = vcombine.high %v1533_v3, %v1541_v4 }
 0x325   : > { %v3405_v21 = vpop.eup %2931  ;;  %v1550_v25 = vrot.slane %v1542_v13, %v3305_v58 }
 0x326   : > { %v1810_v22 = vsel %vm1647_vm1, %v3405_v21, 0.0  ;;  %v3410_v26 = vpop.eup %2933  ;;  %v1573_v49 = vrot.slane %v1559_v45, %v3305_v58 }
 0x327   : > { %1811 = vadd.xlane.f32.xlu1 %v1810_v22  ;;  %v1807_v27 = vsel %vm1647_vm1, %v3410_v26, 0.0 }
 0x32d   : > { %1366 = vrot.lane.b32.xlu0 %v930_v11, %s3012_s23  ;;  %s3679_s23 = sld [smem:[#allocation16_spill]] }
 0x34c   : > { %1808 = vadd.xlane.f32.xlu0 %v1807_v27  ;;  %v1566_v27 = vrot.slane %v1558_v14, %v3305_v58 }
 0x34e   : > { %v1574_v37 = vcombine.low %v1550_v25, %v1566_v27  ;;  %v1575_v42 = vcombine.high %v1550_v25, %v1566_v27 }
 0x3a4   : > { %v1806_v48 = vpop.xlane.xlu0 %1805 }
 0x3a5   : > { %2935 = vrcp.f32 %v1806_v48  ;;  %v1557_v48 = vrot.slane %v1543_v44, %v3305_v58 }
 0x3a7   : > { %v1576_v54 = vcombine.low %v1557_v48, %v1573_v49 }
 0x3a8   : > { %v1367_v55 = vpop.permute.xlu0 %1366 }
 0x3a9   : > { %v1459_v57 = vcombine.high %v1367_v55, %v3009_v1  ;;  %v1466_v59 = vrot.slane %v1367_v55, %v3302_v52 }
 0x3ab   : > { %v1473_v62 = vrot.slane %v1459_v57, %v3302_v52  ;;  %v1474_v63 = vcombine.low %v1451_v56, %v1466_v59  ;;  %v1475_v0 = vcombine.high %v1451_v56, %v1466_v59 }
 0x3ad   : > { %v1482_v5 = vrot.slane %v1474_v63, %v3305_v58  ;;  %v1489_v6 = vrot.slane %v1475_v0, %v3305_v58  ;;  %v1490_v7 = vcombine.low %v1458_v60, %v1473_v62  ;;  %v1491_v8 = vcombine.high %v1458_v60, %v1473_v62 }
 0x3af   : > { %v1498_v9 = vrot.slane %v1490_v7, %v3305_v58  ;;  %v1505_v10 = vrot.slane %v1491_v8, %v3305_v58  ;;  %v1577_v11 = vcombine.low %v1482_v5, %v1489_v6  ;;  %v2589_v12 = vcombine.high %v1482_v5, %v1489_v6  ;;  %v2936_v33 = vpop.eup %2935 }
 0x3b0   : > { %v1816_v39 = vmul.f32 %v2936_v33, %v3401_v15  ;;  %v2912_v33 = vld [vmem:[%s3640_s8 + $0x10] sm:$0xff]  }
 0x3b1   : > { %v1584_v16 = vrot.slane %v1577_v11, %v3302_v52  ;;  %v1592_v17 = vrot.slane %v2589_v12, %v3302_v52  ;;  %v1593_v18 = vcombine.low %v1498_v9, %v1505_v10  ;;  %v2590_v20 = vcombine.high %v1498_v9, %v1505_v10 }
 0x3b2   : > { %v1819_v43 = vpack.c.bf16 %v1816_v39, %v1816_v39 }
 0x3b3   : > { %v1600_v22 = vrot.slane %v1593_v18, %v3302_v52  ;;  %v1608_v23 = vrot.slane %v2590_v20, %v3302_v52  ;;  %v1609_v24 = vcombine.low %v1584_v16, %v1592_v17  ;;  %v1610_v31 = vcombine.high %v1584_v16, %v1592_v17 }
 0x3b4   : > { %v1812_v30 = vpop.xlane.xlu1 %1811 }
 0x3b5   : > { %v1625_v32 = vcombine.low %v1600_v22, %v1608_v23  ;;  %v1617_v34 = vrot.slane %v1609_v24, %v3305_v58  ;;  %v1626_v15 = vcombine.high %v1600_v22, %v1608_v23  ;;  %v1624_v50 = vrot.slane %v1610_v31, %v3305_v58 }
 0x3b7   : > { %v1633_v36 = vrot.slane %v1625_v32, %v3305_v58  ;;  %v1640_v47 = vrot.slane %v1626_v15, %v3305_v58 }
 0x3b9   : > { %v1641_v38 = vcombine.low %v1617_v34, %v1633_v36  ;;  %v1642_v41 = vcombine.high %v1617_v34, %v1633_v36  ;;  %v1643_v51 = vcombine.low %v1624_v50, %v1640_v47 }
 0x3bb   : > { %v1644_v40 = vpack.c.bf16 %v1641_v38, %v1574_v37  ;;  %v1645_v28 = vpack.c.bf16 %v1642_v41, %v1575_v42  ;;  %v1646_v57 = vpack.c.bf16 %v1643_v51, %v1576_v54 }
 0x3bd   : > { %2772 = vmatpush3.bf16.msra.mxu1 %v1644_v40 }
 0x3be   : > { %2777 = vmatprep.subr.bf16.mxu1 %v3009_v1 }
 0x3c0   : > { %2774 = vmatmul.mubr.msk.bf16.vlgmr.msra.gmra.mrb[16].mxu1 %vm1647_vm1, %v1819_v43 }
 0x3c1   : > { %2778 = vmatpush3.bf16.msra.mxu1 %v1645_v28  ;;  %2779 = vmatprep.mubr.msk.bf16.mxu1 %vm3010_vm0, %v3009_v1 }
 0x3c2   : > { %2783 = vmatprep.subr.bf16.mxu1 %v3009_v1 }
 0x3d9   : > { %v1809_v29 = vpop.xlane.xlu0 %1808 }
 0x3da   : > { %2937 = vrcp.f32 %v1809_v29 }
 0x3db   : > { %2939 = vrcp.f32 %v1812_v30 }
 0x3e4   : > { %v2938_v35 = vpop.eup %2937 }
 0x3e5   : > { %v1817_v53 = vmul.f32 %v2938_v35, %v3410_v26  ;;  %v2940_v56 = vpop.eup %2939  ;;  %v2910_v26 = vld [vmem:[%s3640_s8] sm:$0xff]  }
 0x3e6   : > { %v1818_v59 = vmul.f32 %v2940_v56, %v3405_v21  ;;  %2790 = vmatpush3.bf16.msra.mxu0 %v2910_v26  ;;  %v2913_v26 = vld [vmem:[%s3644_s12] sm:$0xff]  }
 0x3e7   : > { %v1820_v55 = vpack.c.bf16 %v1817_v53, %v1817_v53  ;;  %2791 = vmatprep.subr.bf16.mxu0 %v3009_v1 }
 0x3e8   : > { %v1821_v60 = vpack.c.bf16 %v1818_v59, %v1818_v59 }
 0x3e9   : > { %2780 = vmatmul.mubr.msk.bf16.vlgmr.msra.gmra.mrb[20].mxu1 %vm1647_vm1, %v1820_v55 }
 0x3ea   : > { %2784 = vmatpush3.bf16.msra.mxu1 %v1646_v57  ;;  %2785 = vmatprep.mubr.msk.bf16.mxu1 %vm3010_vm0, %v3009_v1 }
 0x3eb   : > { %2799 = vmatprep.subr.bf16.mxu1 %v3009_v1  ;;  %2792 = vmatpush3.bf16.msra.mxu0 %v2911_v61  ;;  %v2914_v61 = vld [vmem:[%s3644_s12 + $0x8] sm:$0xff]  }
 0x3ec   : > { %2793 = vmatprep.subr.bf16.mxu0 %v3009_v1 }
 0x3ef   : > { %2794 = vmatpush3.bf16.msra.mxu0 %v2912_v33  ;;  %v2927_v33 = vld [vmem:[%s3646_s14 + $0x30] sm:$0xff]  }
 0x3f0   : > { %2819 = vmatprep.subr.bf16.mxu0 %v3009_v1 }
 0x3f1   : > { %2786 = vmatmul.mubr.msk.bf16.vlgmr.msra.gmra.mrb[24].mxu1 %vm1647_vm1, %v1821_v60 }
 0x3f2   : > { %2815 = vmatprep.mubr.msk.bf16.mxu1 %vm3010_vm0, %v3009_v1  ;;  %2800 = vmatpush3.bf16.msra.mxu1 %v2913_v26 }
 0x3f3   : > { %2801 = vmatprep.subr.bf16.mxu1 %v3009_v1 }
 0x3f6   : > { %2802 = vmatpush3.bf16.msra.mxu1 %v2914_v61 }
 0x3f7   : > { %2803 = vmatprep.subr.bf16.mxu1 %v3009_v1 }
 0x493   : > { %v1859_v21 = vpop.f32.mrb[16].mxu1 }
 0x494   : > { %v2775_v62 = vpop.f32.mrb[17].mxu1 }
 0x495   : > { %v1862_v63 = vpop.f32.mrb[18].mxu1 }
 0x496   : > { %v2776_v0 = vpop.f32.mrb[19].mxu1 }
 0x4bc   : > { %v1902_v2 = vpop.f32.mrb[20].mxu1 }
 0x4bd   : > { %v2781_v3 = vpop.f32.mrb[21].mxu1  ;;  %v1967_v6 = vcombine.high %v1902_v2, %v3009_v1  ;;  %v1974_v12 = vrot.slane %v1902_v2, %v3302_v52 }
 0x4be   : > { %v1905_v4 = vpop.f32.mrb[22].mxu1 }
 0x4bf   : > { %v2782_v5 = vpop.f32.mrb[23].mxu1  ;;  %v1981_v13 = vrot.slane %v1967_v6, %v3302_v52  ;;  %v2915_v4 = vld [vmem:[%s3644_s12 + $0x10] sm:$0xff]   ;;  %v2918_v6 = vld [vmem:[%s3644_s12 + $0x28] sm:$0xff]  }
 0x4c0   : > { %2804 = vmatpush3.bf16.msra.mxu1 %v2915_v4  ;;  %v2917_v5 = vld [vmem:[%s3644_s12 + $0x20] sm:$0xff]  }
 0x4c1   : > { %2805 = vmatprep.subr.bf16.mxu1 %v3009_v1 }
 0x4c4   : > { %v1945_v7 = vpop.f32.mrb[24].mxu1 }
 0x4c5   : > { %v1951_v8 = vcombine.low %v1859_v21, %v1945_v7  ;;  %v1952_v9 = vcombine.high %v1859_v21, %v1945_v7  ;;  %v2787_v10 = vpop.f32.mrb[25].mxu1  ;;  %v2173_v21 = vand.u32 127, %v945_v46  ;;  %v2916_v46 = vld [vmem:[%s3644_s12 + $0x18] sm:$0xff]   ;;  %v2919_v7 = vld [vmem:[%s3644_s12 + $0x30] sm:$0xff]  }
 0x4c6   : > { %v1948_v11 = vpop.f32.mrb[26].mxu1  ;;  %2806 = vmatpush3.bf16.msra.mxu1 %v2916_v46  ;;  %v2920_v10 = vld [vmem:[%s3644_s12 + $0x38] sm:$0xff]  }
 0x4c7   : > { %v1959_v14 = vrot.slane %v1951_v8, %v3302_v52  ;;  %v1966_v16 = vrot.slane %v1952_v9, %v3302_v52  ;;  %v2788_v17 = vpop.f32.mrb[27].mxu1  ;;  %vm2174_vm4 = vcmp.lt.s32.totalorder %v2173_v21, 48  ;;  %2807 = vmatprep.subr.bf16.mxu1 %v3009_v1  ;;  %v2921_v8 = vld [vmem:[%s3646_s14] sm:$0xff]   ;;  %v2922_v9 = vld [vmem:[%s3646_s14 + $0x8] sm:$0xff]   ;;  %v2923_v11 = vld [vmem:[%s3646_s14 + $0x10] sm:$0xff]  }
 0x4c8   : > { %v3509_v63 = vsel %vm2174_vm4, 1.0, %v3009_v1 }
 0x4c9   : > { %v1982_v18 = vcombine.low %v1959_v14, %v1974_v12  ;;  %v1983_v20 = vcombine.high %v1959_v14, %v1974_v12  ;;  %v1998_v22 = vcombine.low %v1966_v16, %v1981_v13  ;;  %v1999_v23 = vcombine.high %v1966_v16, %v1981_v13  ;;  %v2924_v12 = vld [vmem:[%s3646_s14 + $0x18] sm:$0xff]   ;;  %v2925_v13 = vld [vmem:[%s3646_s14 + $0x20] sm:$0xff]   ;;  %v2926_v14 = vld [vmem:[%s3646_s14 + $0x28] sm:$0xff]  }
 0x4ca   : > { %2808 = vmatpush3.bf16.msra.mxu1 %v2917_v5 }
 0x4cb   : > { %v1990_v24 = vrot.slane %v1982_v18, %v3305_v58  ;;  %v1997_v25 = vrot.slane %v1983_v20, %v3305_v58  ;;  %v2006_v27 = vrot.slane %v1998_v22, %v3305_v58  ;;  %v2013_v32 = vrot.slane %v1999_v23, %v3305_v58  ;;  %2809 = vmatprep.subr.bf16.mxu1 %v3009_v1  ;;  %v2605_v22 = vld [vmem:[%s3642_s10] ss:$0 sm:$0xff] }
 0x4cd   : > { %v2018_v34 = vcombine.low %v1990_v24, %v1997_v25  ;;  %v2597_v36 = vcombine.high %v1990_v24, %v1997_v25  ;;  %v2034_v37 = vcombine.low %v2006_v27, %v2013_v32  ;;  %v2598_v38 = vcombine.high %v2006_v27, %v2013_v32  ;;  %v2606_v24 = vld [vmem:[%s3643_s11] ss:$0 sm:$0xff] }
 0x4ce   : > { %2810 = vmatpush3.bf16.msra.mxu1 %v2918_v6 }
 0x4cf   : > { %v2025_v39 = vrot.slane %v2018_v34, %v3302_v52  ;;  %v2033_v40 = vrot.slane %v2597_v36, %v3302_v52  ;;  %v2041_v41 = vrot.slane %v2034_v37, %v3302_v52  ;;  %v2049_v42 = vrot.slane %v2598_v38, %v3302_v52  ;;  %2811 = vmatprep.subr.bf16.mxu1 %v3009_v1  ;;  %v2928_v34 = vld [vmem:[%s3646_s14 + $0x38] sm:$0xff]   ;;  %v2607_v36 = vld [vmem:[%s3645_s13] ss:$0 sm:$0xff] }
 0x4d1   : > { %v2051_v43 = vcombine.high %v2025_v39, %v2033_v40  ;;  %v2067_v28 = vcombine.high %v2041_v41, %v2049_v42  ;;  %v2050_v29 = vcombine.low %v2025_v39, %v2033_v40  ;;  %v2066_v30 = vcombine.low %v2041_v41, %v2049_v42 }
 0x4d2   : > { %2812 = vmatpush3.bf16.msra.mxu1 %v2919_v7 }
 0x4d3   : > { %v2065_v15 = vrot.slane %v2051_v43, %v3305_v58  ;;  %v2081_v31 = vrot.slane %v2067_v28, %v3305_v58  ;;  %v2058_v44 = vrot.slane %v2050_v29, %v3305_v58  ;;  %v2074_v45 = vrot.slane %v2066_v30, %v3305_v58  ;;  %v2599_v58 = vld [vmem:[%s3641_s9] ss:$0 sm:$0xff]  ;;  %2813 = vmatprep.subr.bf16.mxu1 %v3009_v1 }
 0x4d4   : > { %v2616_v28 = vld [vmem:[%s3647_s15] ss:$0 sm:$0xff] }
 0x4d5   : > { %v2084_v47 = vcombine.low %v2065_v15, %v2081_v31  ;;  %v2083_v48 = vcombine.high %v2058_v44, %v2074_v45  ;;  %v2082_v49 = vcombine.low %v2058_v44, %v2074_v45 }
 0x4d6   : > { %2814 = vmatpush3.bf16.msra.mxu1 %v2920_v10 }
 0x4d7   : > { %2090 = vrot.lane.b32.xlu1 %v2084_v47, %s3015_s18  ;;  %2086 = vrot.lane.b32.xlu0 %v2083_v48, %s3016_s26  ;;  %s3680_s26 = sld [smem:[#allocation17_spill]] }
 0x4dd   : > { %s3590_s3 = scalar_lea.hbm %s3680_s26, %s2628_s1 }
 0x549   : > { %v2091_v52 = vpop.permute.xlu1 %2090  ;;  %v2087_v50 = vpop.permute.xlu0 %2086 }
 0x54a   : > { %v2093_v35 = vsel %vm1647_vm1, %v2082_v49, %v2087_v50 }
 0x54b   : > { %v2095_v51 = vsel %vm2094_vm2, %v2093_v35, %v2091_v52 }
 0x54c   : > { %v2096_v53 = vpack.c.bf16 %v2095_v51, %v2095_v51 }
 0x54e   : > { %2796 = vmatmul.mubr.msk.bf16.vlgmr.msra.gmra.mrb[8].mxu0 %vm2128_vm3, %v2096_v53 }
 0x54f   : > { %2835 = vmatprep.mubr.msk.bf16.mxu0 %vm3010_vm0, %v3009_v1  ;;  %2820 = vmatpush3.bf16.msra.mxu0 %v2921_v8 }
 0x550   : > { %2821 = vmatprep.subr.bf16.mxu0 %v3009_v1 }
 0x553   : > { %2822 = vmatpush3.bf16.msra.mxu0 %v2922_v9 }
 0x554   : > { %2823 = vmatprep.subr.bf16.mxu0 %v3009_v1 }
 0x557   : > { %2824 = vmatpush3.bf16.msra.mxu0 %v2923_v11 }
 0x558   : > { %2825 = vmatprep.subr.bf16.mxu0 %v3009_v1 }
 0x55b   : > { %2826 = vmatpush3.bf16.msra.mxu0 %v2924_v12 }
 0x55c   : > { %2827 = vmatprep.subr.bf16.mxu0 %v3009_v1 }
 0x55f   : > { %2828 = vmatpush3.bf16.msra.mxu0 %v2925_v13 }
 0x560   : > { %2829 = vmatprep.subr.bf16.mxu0 %v3009_v1 }
 0x563   : > { %2830 = vmatpush3.bf16.msra.mxu0 %v2926_v14 }
 0x564   : > { %2831 = vmatprep.subr.bf16.mxu0 %v3009_v1 }
 0x567   : > { %2832 = vmatpush3.bf16.msra.mxu0 %v2927_v33 }
 0x568   : > { %2833 = vmatprep.subr.bf16.mxu0 %v3009_v1 }
 0x56b   : > { %2834 = vmatpush3.bf16.msra.mxu0 %v2928_v34 }
 0x621   : > { %v2166_v54 = vpop.f32.mrb[8].mxu0 }
 0x622   : > { %v2167_v55 = vadd.f32 %v2599_v58, %v2166_v54  ;;  %v2797_v56 = vpop.f32.mrb[9].mxu0  ;;  %v2625_v58 = vld [vmem:[%s3678_s20] ss:$0 sm:$0xff]  ;;  %s2951_s20 = scalar_lea.vmem %s2950_s29, 256 }
 0x623   : > { %v2169_v57 = vpop.f32.mrb[10].mxu0  ;;  %p2953_p1 = scmp.lt.s32.totalorder %s2951_s20, %s2945_s19 }
 0x624   : > { %v2798_v59 = vpop.f32.mrb[11].mxu0  ;;  %v2177_v60 = vadd.f32 %v2167_v55, %v3235_v19  ;;  %v2626_v55 = vld [vmem:[%s3679_s23] ss:$0 sm:$0xff] }
 0x625   : > { %p2954_p2 = por %p2953_p1, %p2952_p0 }
 0x626   : > { %2180 = vadd.xlane.f32.xlu0 %v2177_v60 }
 0x627   : > { %p2955_p3 = pnand %p2954_p2, %p2948_p13 }
 0x6b3   : > { %v2181_v62 = vpop.xlane.xlu0 %2180 }
 0x6b4   : > { %v2182_v19 = vmul.f32 0.020833334, %v2181_v62 }
 0x6b6   : > { %v2183_v0 = vsub.f32 %v2177_v60, %v2182_v19 }
 0x6b8   : > { %v2184_v2 = vmul.f32 %v3509_v63, %v2183_v0 }
 0x6ba   : > { %v2185_v3 = vmul.f32 %v2184_v2, %v2184_v2 }
 0x6bc   : > { %2186 = vadd.xlane.f32.xlu1 %v2185_v3 }
 0x749   : > { %v2187_v16 = vpop.xlane.xlu1 %2186 }
 0x74a   : > { %v2188_v17 = vmul.f32 0.020833334, %v2187_v16 }
 0x74c   : > { %v2189_v18 = vadd.f32 1e-05, %v2188_v17 }
 0x74e   : > { %2941 = vrsqrt.f32 %v2189_v18 }
 0x758   : > { %v2942_v20 = vpop.eup %2941 }
 0x759   : > { %v2191_v23 = vmul.f32 %v2942_v20, %v2184_v2 }
 0x75b   : > { %v2198_v25 = vmul.f32 %v2605_v22, %v2191_v23 }
 0x75d   : > { %v2205_v27 = vadd.f32 %v2606_v24, %v2198_v25 }
 0x75f   : > { %v2206_v32 = vpack.c.bf16 %v2205_v27, %v2205_v27 }
 0x761   : > { %2816 = vmatmul.mubr.bf16.vlgmr.msra.gmra.mrb[28].mxu1 %v2206_v32 }
 0x834   : > { %v2312_v37 = vpop.f32.mrb[28].mxu1 }
 0x835   : > { %v2313_v38 = vadd.f32 %v2607_v36, %v2312_v37  ;;  %v2817_v39 = vpop.f32.mrb[29].mxu1 }
 0x836   : > { %v2315_v40 = vpop.f32.mrb[30].mxu1 }
 0x837   : > { %v2318_v41 = vmax.f32 %v2313_v38, 0.0  ;;  %v2818_v42 = vpop.f32.mrb[31].mxu1 }
 0x839   : > { %v2319_v43 = vpack.c.bf16 %v2318_v41, %v2318_v41 }
 0x83b   : > { %2836 = vmatmul.mubr.bf16.vlgmr.msra.gmra.mrb[12].mxu0 %v2319_v43 }
 0x90e   : > { %v2425_v29 = vpop.f32.mrb[12].mxu0 }
 0x90f   : > { %v2426_v30 = vadd.f32 %v2616_v28, %v2425_v29  ;;  %v2837_v1 = vpop.f32.mrb[13].mxu0 }
 0x910   : > { %v2428_v15 = vpop.f32.mrb[14].mxu0 }
 0x911   : > { %v2838_v31 = vpop.f32.mrb[15].mxu0  ;;  %v2431_v44 = vadd.f32 %v2426_v30, %v2205_v27 }
 0x913   : > { %2434 = vadd.xlane.f32.xlu0 %v2431_v44 }
 0x9a0   : > { %v2435_v45 = vpop.xlane.xlu0 %2434 }
 0x9a1   : > { %v2436_v47 = vmul.f32 0.020833334, %v2435_v45 }
 0x9a3   : > { %v2437_v48 = vsub.f32 %v2431_v44, %v2436_v47 }
 0x9a5   : > { %v2438_v49 = vmul.f32 %v3509_v63, %v2437_v48 }
 0x9a7   : > { %v2439_v52 = vmul.f32 %v2438_v49, %v2438_v49 }
 0x9a9   : > { %2440 = vadd.xlane.f32.xlu0 %v2439_v52 }
 0xa36   : > { %v2441_v50 = vpop.xlane.xlu0 %2440 }
 0xa37   : > { %v2442_v35 = vmul.f32 0.020833334, %v2441_v50 }
 0xa39   : > { %v2443_v51 = vadd.f32 1e-05, %v2442_v35 }
 0xa3b   : > { %2943 = vrsqrt.f32 %v2443_v51 }
 0xa45   : > { %v2944_v53 = vpop.eup %2943 }
 0xa46   : > { %v2445_v54 = vmul.f32 %v2944_v53, %v2438_v49 }
 0xa48   : > { %v2452_v56 = vmul.f32 %v2625_v58, %v2445_v54 }
 0xa4a   : > { %v2459_v57 = vadd.f32 %v2626_v55, %v2452_v56 }
 0xa4c   : > { %2460 = vst [vmem:[%s581_s24] sm:$0xff] %v2459_v57 }
 0xa4d   : > { %2958 = shalt.err (!%p2955_p3)
}
 0xa4e   : > { %s2959_s25 = scalar_lea.hbm %s3590_s3, 128  ;;  %s2963_s23 = scalar_lea.hbm %s3680_s26, 256 }
 0xa4f   : > { %p2960_p4 = scmp.ne.s32.totalorder %s3590_s3, %s2959_s25  ;;  %p2964_p9 = scmp.lt.u32.totalorder %s3590_s3, %s3680_s26 }
 0xa50   : > { %p2965_p10 = scmp.lt.u32.totalorder %s2963_s23, %s2959_s25  ;;  %p2967_p12 = scmp.lt.u32.totalorder %s2959_s25, %s3590_s3 }
 0xa51   : > { %p2961_p7 = pnand %p2960_p4, %p3151_p5 }
 0xa52   : > { %p2966_p11 = por %p2965_p10, %p2964_p9 }
 0xa53   : > { %p2962_p8 = pneg %p2961_p7 }
 0xa54   : > { %p2968_p13 = por %p2967_p12, %p2966_p11 }
 0xa56   : > { %p2969_p0 = pnand %p2968_p13, %p2962_p8 }
 0xa58   : > { %2972 = shalt.err (!%p2969_p0)
}
 0xa59   : > { %2839 = dma.vmem_to_hbm [thread:$0]  (%p3151_p5), %s3592_s16, 128, %s3590_s3, %s2462_s30  }
 0xa5a PF: > { %s3681_s17 = sld [smem:[#allocation7_spill]]  ;;  %s3682_s18 = sld [smem:[#allocation5_spill]] }
 0xa60   : > { %p2845_p1 = scmp.ge.s32.totalorder %s3681_s17, 2  ;;  %s2487_s0 = sand.u32 1, %s3682_s18  }
 0xa61   : > { %s2488_s29 = scalar_lea.sflag [#allocation3], %s2487_s0 }
 0xa62   : > { %p2842_p2 = pnand %p2845_p1, %p3155_p6 }
 0xa64   : > { %2990 = dma.done.wait (!%p2842_p2), %s2488_s29, 128  }
 0xa65   : > { %2992 = vsyncadd (!%p2842_p2), %s2488_s29, 4294967168  ;;  %s3684_s30 = sld [smem:[#allocation8_spill]]  ;;  %s3685_s20 = sld [smem:[#allocation6_spill]] }
 0xa66   : > { %s3686_s29 = sld [smem:[#allocation9_spill]]  ;;  %s3687_s27 = smov %s2999_s28 }
 0xa6b   : > { %p28_p3 = scmp.ge.s32.totalorder %s3684_s30, 4   ;;  %s3688_s28 = smov %s3685_s20 }
 0xa6d   :  { %30 = sbr.rel (!%p28_p3) target bundleno = 11 (0xb), region = 130 }
 0xa74   :  { %2493 = vsyncpa [#allocation3], 1 }
 0xa75   :  { %2495 = vsyncpa [#allocation3 + $0x1], 1 }

</bundles_post_ra>
